<compile_context>
chip_gen: v5e
topology: v5e:2x2
jax: 0.10.0
libtpu: 0.0.40
codegen_flags: <defaults>
</compile_context>

<pallas_src>
import functools

import jax
import jax.numpy as jnp
from jax.experimental import pallas as pl
from jax.experimental.pallas import tpu as pltpu

# ----------------------------- config (small synthetic BERT) -----------------
VOCAB = 100
HIDDEN = 32
N_HEADS = 4
HEAD_DIM = HIDDEN // N_HEADS
INTERMEDIATE = 64
N_LAYERS = 2
MAX_POS = 16
SEQ = 8
BATCH = 2
N_OUT = 3            # fc = nn.Linear(hidden_size, 3)
N_OUT_PAD = 128      # lane-dense padded head width (sliced back to 3 in JAX)
LN_EPS = 1e-12       # BERT layernorm eps


# ----------------------------- fused whole-model kernel ----------------------
def _bert_encoder_kernel(
    # inputs
    word_ref, pos_ref, type_ref, eg_ref, eb_ref, mask_ref,
    wqkv_ref, bqkv_ref, wo_ref, bo_ref,
    ln1g_ref, ln1b_ref, w1_ref, b1_ref, w2_ref, b2_ref, ln2g_ref, ln2b_ref,
    fcw_ref, fcb_ref,
    # outputs
    out_ref,
    # scratch
    h_ref,
    *, batch, seq,
):
    l = pl.program_id(0)
    m_tokens = batch * seq

    def layer_norm(x, g, b):
        mu = jnp.mean(x, axis=-1, keepdims=True)
        var = jnp.mean(jnp.square(x - mu), axis=-1, keepdims=True)
        return (x - mu) * jax.lax.rsqrt(var + LN_EPS) * g + b

    # ---- step 0: fused embedding add + embedding LayerNorm into VMEM h ----
    @pl.when(l == 0)
    def _():
        emb = word_ref[...] + pos_ref[...] + type_ref[...]        # (B, S, H)
        h_ref[...] = layer_norm(emb.reshape(m_tokens, HIDDEN),
                                eg_ref[...], eb_ref[...])

    mask = mask_ref[...]                                          # (B, S) f32
    key_bias = (1.0 - mask) * -1e9                                # additive key mask

    x = h_ref[...]                                                # (B*S, H), VMEM-resident

    # ---- fused QKV projection: one (B*S, H) @ (H, 3H) matmul ----
    qkv = jnp.dot(x, wqkv_ref[0], preferred_element_type=jnp.float32) + bqkv_ref[0]
    q = qkv[:, 0:HIDDEN]
    k = qkv[:, HIDDEN:2 * HIDDEN]
    v = qkv[:, 2 * HIDDEN:3 * HIDDEN]

    # ---- multi-head attention, all batches per head (static head unroll),
    #      with the output projection Wo folded in per head (no lane concat) --
    scale = 1.0 / (HEAD_DIM ** 0.5)
    wo = wo_ref[0]                                                # (H, H)
    attn_acc = jnp.zeros((m_tokens, HIDDEN), jnp.float32)
    for hh in range(N_HEADS):
        sl = slice(hh * HEAD_DIM, (hh + 1) * HEAD_DIM)
        qh = q[:, sl].reshape(batch, seq, HEAD_DIM)
        kh = k[:, sl].reshape(batch, seq, HEAD_DIM)
        vh = v[:, sl].reshape(batch, seq, HEAD_DIM)
        s = jnp.einsum('bqd,bkd->bqk', qh, kh,
                       preferred_element_type=jnp.float32) * scale
        s = s + key_bias[:, None, :]                              # (B,1,S) key mask
        m = jnp.max(s, axis=-1, keepdims=True)
        p = jnp.exp(s - m)
        p = p * pl.reciprocal(jnp.sum(p, axis=-1, keepdims=True), approx=True)
        ch = jnp.einsum('bqk,bkd->bqd', p, vh,
                        preferred_element_type=jnp.float32)
        ch2 = ch.reshape(m_tokens, HEAD_DIM)
        # concat(ctx_h) @ Wo  ==  sum_h ctx_h @ Wo[h*D:(h+1)*D, :]
        attn_acc = attn_acc + jnp.dot(
            ch2, wo[sl, :], preferred_element_type=jnp.float32)

    attn_out = attn_acc + bo_ref[0]
    h1 = layer_norm(attn_out + x, ln1g_ref[0], ln1b_ref[0])       # fused residual + LN

    # ---- FFN: matmul + GELU + matmul + residual + LN, all in-kernel ----
    # TODO(synk): HF BERT uses exact (erf) GELU; tanh approximation used here.
    ffn = jnp.dot(h1, w1_ref[0], preferred_element_type=jnp.float32) + b1_ref[0]
    ffn = jax.nn.gelu(ffn, approximate=True)
    ffn = jnp.dot(ffn, w2_ref[0], preferred_element_type=jnp.float32) + b2_ref[0]
    h2 = layer_norm(ffn + h1, ln2g_ref[0], ln2b_ref[0])
    h_ref[...] = h2                                               # stays in VMEM

    # ---- last layer: masked mean pooling + dropout(identity) + fc head ----
    @pl.when(l == pl.num_programs(0) - 1)
    def _():
        h3 = h2.reshape(batch, seq, HIDDEN)
        me = mask[:, :, None]                                     # (B, S, 1)
        summed = jnp.sum(h3 * me, axis=1)                         # (B, H)
        denom = jnp.maximum(jnp.sum(me, axis=1), 1e-9)            # torch.clamp(min=1e-9)
        pooled = summed * pl.reciprocal(denom, approx=True)
        # TODO(synk): Dropout(p=0.3) is identity in eval mode (no training RNG).
        y = jnp.dot(pooled, fcw_ref[...],
                    preferred_element_type=jnp.float32) + fcb_ref[...]
        out_ref[...] = y.astype(out_ref.dtype)                    # lane-dense (B, 128)


# ----------------------------- model ------------------------------------------
def init_params(key):
    def init(k, shape):
        return 0.02 * jax.random.normal(k, shape, jnp.float32)

    keys = iter(jax.random.split(key, 64))
    params = {
        "word_emb": init(next(keys), (VOCAB, HIDDEN)),
        "pos_emb": init(next(keys), (MAX_POS, HIDDEN)),
        "type_emb": init(next(keys), (2, HIDDEN)),
        "emb_ln_g": jnp.ones((HIDDEN,), jnp.float32),
        "emb_ln_b": jnp.zeros((HIDDEN,), jnp.float32),
        "fc_w": init(next(keys), (HIDDEN, N_OUT)),
        "fc_b": jnp.zeros((N_OUT,), jnp.float32),
        "layers": [],
    }
    for _ in range(N_LAYERS):
        layer = {
            "wq": init(next(keys), (HIDDEN, HIDDEN)), "bq": jnp.zeros((HIDDEN,)),
            "wk": init(next(keys), (HIDDEN, HIDDEN)), "bk": jnp.zeros((HIDDEN,)),
            "wv": init(next(keys), (HIDDEN, HIDDEN)), "bv": jnp.zeros((HIDDEN,)),
            "wo": init(next(keys), (HIDDEN, HIDDEN)), "bo": jnp.zeros((HIDDEN,)),
            "ln1_g": jnp.ones((HIDDEN,)), "ln1_b": jnp.zeros((HIDDEN,)),
            "w1": init(next(keys), (HIDDEN, INTERMEDIATE)),
            "b1": jnp.zeros((INTERMEDIATE,)),
            "w2": init(next(keys), (INTERMEDIATE, HIDDEN)),
            "b2": jnp.zeros((HIDDEN,)),
            "ln2_g": jnp.ones((HIDDEN,)), "ln2_b": jnp.zeros((HIDDEN,)),
        }
        params["layers"].append(layer)
    return params


def bert_regressor_forward(params, input_ids, attention_mask):
    """Inference path of BertRegressor.forward (no V/A/D targets -> predictions)."""
    B, S = input_ids.shape
    L = N_LAYERS
    mask_f = attention_mask.astype(jnp.float32)

    # --- embedding gathers stay in JAX glue ---
    word_g = params["word_emb"][input_ids]                 # (B, S, H)
    pos_e = params["pos_emb"][:S][None]                    # (1, S, H)
    type_e = params["type_emb"][0][None, None]             # (1, 1, H) token_type_ids == 0

    # --- stack per-layer weights along a leading "layer" axis ---
    layers = params["layers"]

    def stack(name):
        return jnp.stack([lyr[name] for lyr in layers], axis=0)

    wqkv = jnp.stack([jnp.concatenate([lyr["wq"], lyr["wk"], lyr["wv"]], axis=1)
                      for lyr in layers], axis=0)                        # (L, H, 3H)
    bqkv = jnp.stack([jnp.concatenate([lyr["bq"], lyr["bk"], lyr["bv"]])[None]
                      for lyr in layers], axis=0)                        # (L, 1, 3H)
    wo = stack("wo")                                                     # (L, H, H)
    bo = stack("bo")[:, None, :]                                         # (L, 1, H)
    ln1g = stack("ln1_g")[:, None, :]
    ln1b = stack("ln1_b")[:, None, :]
    w1 = stack("w1")                                                     # (L, H, I)
    b1 = stack("b1")[:, None, :]                                         # (L, 1, I)
    w2 = stack("w2")                                                     # (L, I, H)
    b2 = stack("b2")[:, None, :]
    ln2g = stack("ln2_g")[:, None, :]
    ln2b = stack("ln2_b")[:, None, :]

    # --- lane-dense padded fc head (sliced back to 3 after the kernel) ---
    fcw = jnp.zeros((HIDDEN, N_OUT_PAD), jnp.float32).at[:, :N_OUT].set(params["fc_w"])
    fcb = jnp.zeros((1, N_OUT_PAD), jnp.float32).at[:, :N_OUT].set(params["fc_b"][None])

    const2 = lambda l: (0, 0)
    const3 = lambda l: (0, 0, 0)
    per_layer = lambda l: (l, 0, 0)

    out = pl.pallas_call(
        functools.partial(_bert_encoder_kernel, batch=B, seq=S),
        out_shape=jax.ShapeDtypeStruct((B, N_OUT_PAD), jnp.float32),
        grid_spec=pltpu.PrefetchScalarGridSpec(
            num_scalar_prefetch=0,
            grid=(L,),
            in_specs=[
                pl.BlockSpec((B, S, HIDDEN), const3),                    # word emb (gathered)
                pl.BlockSpec((1, S, HIDDEN), const3),                    # position emb
                pl.BlockSpec((1, 1, HIDDEN), const3),                    # token-type emb row 0
                pl.BlockSpec((1, HIDDEN), const2),                       # emb LN gamma
                pl.BlockSpec((1, HIDDEN), const2),                       # emb LN beta
                pl.BlockSpec((B, S), const2),                            # attention mask (f32)
                pl.BlockSpec((1, HIDDEN, 3 * HIDDEN), per_layer),        # Wqkv
                pl.BlockSpec((1, 1, 3 * HIDDEN), per_layer),             # bqkv
                pl.BlockSpec((1, HIDDEN, HIDDEN), per_layer),            # Wo
                pl.BlockSpec((1, 1, HIDDEN), per_layer),                 # bo
                pl.BlockSpec((1, 1, HIDDEN), per_layer),                 # LN1 gamma
                pl.BlockSpec((1, 1, HIDDEN), per_layer),                 # LN1 beta
                pl.BlockSpec((1, HIDDEN, INTERMEDIATE), per_layer),      # W1
                pl.BlockSpec((1, 1, INTERMEDIATE), per_layer),           # b1
                pl.BlockSpec((1, INTERMEDIATE, HIDDEN), per_layer),      # W2
                pl.BlockSpec((1, 1, HIDDEN), per_layer),                 # b2
                pl.BlockSpec((1, 1, HIDDEN), per_layer),                 # LN2 gamma
                pl.BlockSpec((1, 1, HIDDEN), per_layer),                 # LN2 beta
                pl.BlockSpec((HIDDEN, N_OUT_PAD), const2),               # fc W (padded)
                pl.BlockSpec((1, N_OUT_PAD), const2),                    # fc b (padded)
            ],
            out_specs=pl.BlockSpec((B, N_OUT_PAD), const2),
            scratch_shapes=[pltpu.VMEM((B * S, HIDDEN), jnp.float32)],   # resident hidden state
        ),
        compiler_params=pltpu.CompilerParams(
            dimension_semantics=("arbitrary",),    # layer axis is a sequential carry
        ),
    )(word_g, pos_e, type_e,
      params["emb_ln_g"][None], params["emb_ln_b"][None], mask_f,
      wqkv, bqkv, wo, bo, ln1g, ln1b, w1, b1, w2, b2, ln2g, ln2b,
      fcw, fcb)

    return out[:, :N_OUT]                                                # (B, 3)


# ----------------------------- main -------------------------------------------
if __name__ == "__main__":
    root = jax.random.PRNGKey(0)
    pkey, dkey = jax.random.split(root)

    params = init_params(pkey)
    input_ids = jax.random.randint(dkey, (BATCH, SEQ), 0, VOCAB, dtype=jnp.int32)
    # second example has 2 padded positions to exercise the masked mean pooling
    attention_mask = jnp.array([[1] * SEQ,
                                [1] * (SEQ - 2) + [0, 0]], dtype=jnp.int32)

    fwd = jax.jit(bert_regressor_forward)
    preds = fwd(params, input_ids, attention_mask)
    preds = jax.block_until_ready(preds)
    assert preds.shape == (BATCH, N_OUT) and preds.dtype == jnp.float32
    print("KERNEL_OK")
</pallas_src>

<mosaic_0001>
module attributes {stable_mosaic.version = 11 : i64} {
  func.func @_bert_encoder_kernel(%arg0: i32, %arg1: memref<2x8x32xf32, #tpu.memory_space<vmem>>, %arg2: memref<1x8x32xf32, #tpu.memory_space<vmem>>, %arg3: memref<1x1x32xf32, #tpu.memory_space<vmem>>, %arg4: memref<1x32xf32, #tpu.memory_space<vmem>>, %arg5: memref<1x32xf32, #tpu.memory_space<vmem>>, %arg6: memref<2x8xf32, #tpu.memory_space<vmem>>, %arg7: memref<1x32x96xf32, #tpu.memory_space<vmem>>, %arg8: memref<1x1x96xf32, #tpu.memory_space<vmem>>, %arg9: memref<1x32x32xf32, #tpu.memory_space<vmem>>, %arg10: memref<1x1x32xf32, #tpu.memory_space<vmem>>, %arg11: memref<1x1x32xf32, #tpu.memory_space<vmem>>, %arg12: memref<1x1x32xf32, #tpu.memory_space<vmem>>, %arg13: memref<1x32x64xf32, #tpu.memory_space<vmem>>, %arg14: memref<1x1x64xf32, #tpu.memory_space<vmem>>, %arg15: memref<1x64x32xf32, #tpu.memory_space<vmem>>, %arg16: memref<1x1x32xf32, #tpu.memory_space<vmem>>, %arg17: memref<1x1x32xf32, #tpu.memory_space<vmem>>, %arg18: memref<1x1x32xf32, #tpu.memory_space<vmem>>, %arg19: memref<32x128xf32, #tpu.memory_space<vmem>>, %arg20: memref<1x128xf32, #tpu.memory_space<vmem>>, %arg21: memref<2x128xf32, #tpu.memory_space<vmem>>, %arg22: memref<16x32xf32, #tpu.memory_space<vmem>>) attributes {dimension_semantics = [#tpu.dimension_semantics<arbitrary>], iteration_bounds = array<i64: 2>, scalar_prefetch = 0 : i64, scratch_operands = 1 : i64, tpu.core_type = #tpu.core_type<tc>, window_params = [{pipeline_mode = #tpu.pipeline_mode<synchronous>, transform_indices = @transform_0, window_bounds = array<i64: 2, 8, 32>}, {pipeline_mode = #tpu.pipeline_mode<synchronous>, transform_indices = @transform_1, window_bounds = array<i64: 1, 8, 32>}, {pipeline_mode = #tpu.pipeline_mode<synchronous>, transform_indices = @transform_2, window_bounds = array<i64: 1, 1, 32>}, {pipeline_mode = #tpu.pipeline_mode<synchronous>, transform_indices = @transform_3, window_bounds = array<i64: 1, 32>}, {pipeline_mode = #tpu.pipeline_mode<synchronous>, transform_indices = @transform_4, window_bounds = array<i64: 1, 32>}, {pipeline_mode = #tpu.pipeline_mode<synchronous>, transform_indices = @transform_5, window_bounds = array<i64: 2, 8>}, {transform_indices = @transform_6, window_bounds = array<i64: 1, 32, 96>}, {transform_indices = @transform_7, window_bounds = array<i64: 1, 1, 96>}, {transform_indices = @transform_8, window_bounds = array<i64: 1, 32, 32>}, {transform_indices = @transform_9, window_bounds = array<i64: 1, 1, 32>}, {transform_indices = @transform_10, window_bounds = array<i64: 1, 1, 32>}, {transform_indices = @transform_11, window_bounds = array<i64: 1, 1, 32>}, {transform_indices = @transform_12, window_bounds = array<i64: 1, 32, 64>}, {transform_indices = @transform_13, window_bounds = array<i64: 1, 1, 64>}, {transform_indices = @transform_14, window_bounds = array<i64: 1, 64, 32>}, {transform_indices = @transform_15, window_bounds = array<i64: 1, 1, 32>}, {transform_indices = @transform_16, window_bounds = array<i64: 1, 1, 32>}, {transform_indices = @transform_17, window_bounds = array<i64: 1, 1, 32>}, {pipeline_mode = #tpu.pipeline_mode<synchronous>, transform_indices = @transform_18, window_bounds = array<i64: 32, 128>}, {pipeline_mode = #tpu.pipeline_mode<synchronous>, transform_indices = @transform_19, window_bounds = array<i64: 1, 128>}, {pipeline_mode = #tpu.pipeline_mode<synchronous>, transform_indices = @transform_20, window_bounds = array<i64: 2, 128>}]} {
    %c0_i32 = arith.constant 0 : i32
    %0 = arith.cmpi eq, %arg0, %c0_i32 : i32
    %1 = arith.extui %0 : i1 to i32
    %c0_i32_0 = arith.constant 0 : i32
    %2 = arith.cmpi ne, %1, %c0_i32_0 : i32
    scf.if %2 {
      %c0_86 = arith.constant 0 : index
      %c0_87 = arith.constant 0 : index
      %c0_88 = arith.constant 0 : index
      %219 = vector.load %arg1[%c0_86, %c0_87, %c0_88] : memref<2x8x32xf32, #tpu.memory_space<vmem>>, vector<2x8x32xf32>
      %c0_89 = arith.constant 0 : index
      %c0_90 = arith.constant 0 : index
      %c0_91 = arith.constant 0 : index
      %220 = vector.load %arg2[%c0_89, %c0_90, %c0_91] : memref<1x8x32xf32, #tpu.memory_space<vmem>>, vector<1x8x32xf32>
      %221 = vector.broadcast %220 : vector<1x8x32xf32> to vector<2x8x32xf32>
      %222 = arith.addf %219, %221 : vector<2x8x32xf32>
      %c0_92 = arith.constant 0 : index
      %c0_93 = arith.constant 0 : index
      %c0_94 = arith.constant 0 : index
      %223 = vector.load %arg3[%c0_92, %c0_93, %c0_94] : memref<1x1x32xf32, #tpu.memory_space<vmem>>, vector<1x1x32xf32>
      %224 = vector.broadcast %223 : vector<1x1x32xf32> to vector<2x8x32xf32>
      %225 = arith.addf %222, %224 : vector<2x8x32xf32>
      %226 = vector.shape_cast %225 : vector<2x8x32xf32> to vector<16x32xf32>
      %c0_95 = arith.constant 0 : index
      %c0_96 = arith.constant 0 : index
      %227 = vector.load %arg4[%c0_95, %c0_96] : memref<1x32xf32, #tpu.memory_space<vmem>>, vector<1x32xf32>
      %c0_97 = arith.constant 0 : index
      %c0_98 = arith.constant 0 : index
      %228 = vector.load %arg5[%c0_97, %c0_98] : memref<1x32xf32, #tpu.memory_space<vmem>>, vector<1x32xf32>
      %cst_99 = arith.constant dense<0.000000e+00> : vector<16xf32>
      %229 = vector.multi_reduction <add>, %226, %cst_99 [1] : vector<16x32xf32> to vector<16xf32>
      %230 = vector.shape_cast %229 : vector<16xf32> to vector<16x1xf32>
      %cst_100 = arith.constant 3.200000e+01 : f32
      %231 = vector.broadcast %cst_100 : f32 to vector<16x1xf32>
      %232 = arith.divf %230, %231 : vector<16x1xf32>
      %233 = vector.broadcast %232 : vector<16x1xf32> to vector<16x32xf32>
      %234 = arith.subf %226, %233 : vector<16x32xf32>
      %235 = arith.mulf %234, %234 : vector<16x32xf32>
      %cst_101 = arith.constant dense<0.000000e+00> : vector<16xf32>
      %236 = vector.multi_reduction <add>, %235, %cst_101 [1] : vector<16x32xf32> to vector<16xf32>
      %237 = vector.shape_cast %236 : vector<16xf32> to vector<16x1xf32>
      %cst_102 = arith.constant 3.200000e+01 : f32
      %238 = vector.broadcast %cst_102 : f32 to vector<16x1xf32>
      %239 = arith.divf %237, %238 : vector<16x1xf32>
      %240 = vector.broadcast %232 : vector<16x1xf32> to vector<16x32xf32>
      %241 = arith.subf %226, %240 : vector<16x32xf32>
      %cst_103 = arith.constant 9.99999996E-13 : f32
      %242 = vector.broadcast %cst_103 : f32 to vector<16x1xf32>
      %243 = arith.addf %239, %242 : vector<16x1xf32>
      %244 = math.rsqrt %243 : vector<16x1xf32>
      %245 = vector.broadcast %244 : vector<16x1xf32> to vector<16x32xf32>
      %246 = arith.mulf %241, %245 : vector<16x32xf32>
      %247 = vector.broadcast %227 : vector<1x32xf32> to vector<16x32xf32>
      %248 = arith.mulf %246, %247 : vector<16x32xf32>
      %249 = vector.broadcast %228 : vector<1x32xf32> to vector<16x32xf32>
      %250 = arith.addf %248, %249 : vector<16x32xf32>
      %c0_104 = arith.constant 0 : index
      %c0_105 = arith.constant 0 : index
      %251 = vector.load %arg22[%c0_104, %c0_105] : memref<16x32xf32, #tpu.memory_space<vmem>>, vector<16x32xf32>
      tpu.vector_store %arg22[%c0_104, %c0_105], %250 {strides = array<i32>} : memref<16x32xf32, #tpu.memory_space<vmem>>, vector<16x32xf32>,
    } else {
    }
    %c0 = arith.constant 0 : index
    %c0_1 = arith.constant 0 : index
    %3 = vector.load %arg6[%c0, %c0_1] : memref<2x8xf32, #tpu.memory_space<vmem>>, vector<2x8xf32>
    %cst = arith.constant 1.000000e+00 : f32
    %4 = vector.broadcast %cst : f32 to vector<2x8xf32>
    %5 = arith.subf %4, %3 : vector<2x8xf32>
    %cst_2 = arith.constant -1.000000e+09 : f32
    %6 = vector.broadcast %cst_2 : f32 to vector<2x8xf32>
    %7 = arith.mulf %5, %6 : vector<2x8xf32>
    %c0_3 = arith.constant 0 : index
    %c0_4 = arith.constant 0 : index
    %8 = vector.load %arg22[%c0_3, %c0_4] : memref<16x32xf32, #tpu.memory_space<vmem>>, vector<16x32xf32>
    %c0_5 = arith.constant 0 : index
    %c0_6 = arith.constant 0 : index
    %c0_7 = arith.constant 0 : index
    %9 = vector.load %arg7[%c0_5, %c0_6, %c0_7] : memref<1x32x96xf32, #tpu.memory_space<vmem>>, vector<1x32x96xf32>
    %10 = vector.shape_cast %9 : vector<1x32x96xf32> to vector<32x96xf32>
    %cst_8 = arith.constant dense<0.000000e+00> : vector<16x96xf32>
    %11 = tpu.matmul %8, %10, %cst_8 {dimension_numbers = #tpu.dot_dimension_numbers<[1], [0], [0], [1], [0, 0, 1, 1], [], []>} : vector<16x32xf32>, vector<32x96xf32>, vector<16x96xf32> -> vector<16x96xf32>
    %c0_9 = arith.constant 0 : index
    %c0_10 = arith.constant 0 : index
    %c0_11 = arith.constant 0 : index
    %12 = vector.load %arg8[%c0_9, %c0_10, %c0_11] : memref<1x1x96xf32, #tpu.memory_space<vmem>>, vector<1x1x96xf32>
    %13 = vector.shape_cast %12 : vector<1x1x96xf32> to vector<1x96xf32>
    %14 = vector.broadcast %13 : vector<1x96xf32> to vector<16x96xf32>
    %15 = arith.addf %11, %14 : vector<16x96xf32>
    %16 = vector.extract_strided_slice %15 {offsets = [0, 0], sizes = [16, 32], strides = [1, 1]} : vector<16x96xf32> to vector<16x32xf32>
    %17 = vector.extract_strided_slice %15 {offsets = [0, 32], sizes = [16, 32], strides = [1, 1]} : vector<16x96xf32> to vector<16x32xf32>
    %18 = vector.extract_strided_slice %15 {offsets = [0, 64], sizes = [16, 32], strides = [1, 1]} : vector<16x96xf32> to vector<16x32xf32>
    %c0_12 = arith.constant 0 : index
    %c0_13 = arith.constant 0 : index
    %c0_14 = arith.constant 0 : index
    %19 = vector.load %arg9[%c0_12, %c0_13, %c0_14] : memref<1x32x32xf32, #tpu.memory_space<vmem>>, vector<1x32x32xf32>
    %20 = vector.shape_cast %19 : vector<1x32x32xf32> to vector<32x32xf32>
    %cst_15 = arith.constant 0.000000e+00 : f32
    %21 = vector.broadcast %cst_15 : f32 to vector<16x32xf32>
    %22 = vector.extract_strided_slice %16 {offsets = [0, 0], sizes = [16, 8], strides = [1, 1]} : vector<16x32xf32> to vector<16x8xf32>
    %23 = vector.shape_cast %22 : vector<16x8xf32> to vector<2x8x8xf32>
    %24 = vector.extract_strided_slice %17 {offsets = [0, 0], sizes = [16, 8], strides = [1, 1]} : vector<16x32xf32> to vector<16x8xf32>
    %25 = vector.shape_cast %24 : vector<16x8xf32> to vector<2x8x8xf32>
    %26 = vector.extract_strided_slice %18 {offsets = [0, 0], sizes = [16, 8], strides = [1, 1]} : vector<16x32xf32> to vector<16x8xf32>
    %27 = vector.shape_cast %26 : vector<16x8xf32> to vector<2x8x8xf32>
    "tpu.trace_start"() <{level = 10 : i32, message = "bqd,bkd->bqk"}> : () -> ()
    %cst_16 = arith.constant dense<0.000000e+00> : vector<2x8x8xf32>
    %28 = tpu.matmul %23, %25, %cst_16 {dimension_numbers = #tpu.dot_dimension_numbers<[2], [2], [1], [1], [0, 0, 0, 1, 1, 1], [0], [0]>} : vector<2x8x8xf32>, vector<2x8x8xf32>, vector<2x8x8xf32> -> vector<2x8x8xf32>
    "tpu.trace_stop"() : () -> ()
    %cst_17 = arith.constant 0.353553385 : f32
    %29 = vector.broadcast %cst_17 : f32 to vector<2x8x8xf32>
    %30 = arith.mulf %28, %29 : vector<2x8x8xf32>
    %31 = vector.shape_cast %7 : vector<2x8xf32> to vector<2x1x8xf32>
    %32 = vector.broadcast %31 : vector<2x1x8xf32> to vector<2x8x8xf32>
    %33 = arith.addf %30, %32 : vector<2x8x8xf32>
    %cst_18 = arith.constant dense<0xFF800000> : vector<2x8xf32>
    %34 = vector.multi_reduction <maximumf>, %33, %cst_18 [2] : vector<2x8x8xf32> to vector<2x8xf32>
    %35 = vector.shape_cast %34 : vector<2x8xf32> to vector<2x8x1xf32>
    %36 = vector.broadcast %35 : vector<2x8x1xf32> to vector<2x8x8xf32>
    %37 = arith.subf %33, %36 : vector<2x8x8xf32>
    %38 = math.exp %37 : vector<2x8x8xf32>
    %cst_19 = arith.constant dense<0.000000e+00> : vector<2x8xf32>
    %39 = vector.multi_reduction <add>, %38, %cst_19 [2] : vector<2x8x8xf32> to vector<2x8xf32>
    %40 = vector.shape_cast %39 : vector<2x8xf32> to vector<2x8x1xf32>
    %41 = tpu.reciprocal %40 {approx = true} : vector<2x8x1xf32> -> vector<2x8x1xf32>
    %42 = vector.broadcast %41 : vector<2x8x1xf32> to vector<2x8x8xf32>
    %43 = arith.mulf %38, %42 : vector<2x8x8xf32>
    "tpu.trace_start"() <{level = 10 : i32, message = "bqk,bkd->bqd"}> : () -> ()
    %cst_20 = arith.constant dense<0.000000e+00> : vector<2x8x8xf32>
    %44 = tpu.matmul %43, %27, %cst_20 {dimension_numbers = #tpu.dot_dimension_numbers<[2], [1], [1], [2], [0, 0, 0, 1, 1, 2], [0], [0]>} : vector<2x8x8xf32>, vector<2x8x8xf32>, vector<2x8x8xf32> -> vector<2x8x8xf32>
    "tpu.trace_stop"() : () -> ()
    %45 = vector.shape_cast %44 : vector<2x8x8xf32> to vector<16x8xf32>
    %46 = vector.extract_strided_slice %20 {offsets = [0, 0], sizes = [8, 32], strides = [1, 1]} : vector<32x32xf32> to vector<8x32xf32>
    %cst_21 = arith.constant dense<0.000000e+00> : vector<16x32xf32>
    %47 = tpu.matmul %45, %46, %cst_21 {dimension_numbers = #tpu.dot_dimension_numbers<[1], [0], [0], [1], [0, 0, 1, 1], [], []>} : vector<16x8xf32>, vector<8x32xf32>, vector<16x32xf32> -> vector<16x32xf32>
    %48 = arith.addf %21, %47 : vector<16x32xf32>
    %49 = vector.extract_strided_slice %16 {offsets = [0, 8], sizes = [16, 8], strides = [1, 1]} : vector<16x32xf32> to vector<16x8xf32>
    %50 = vector.shape_cast %49 : vector<16x8xf32> to vector<2x8x8xf32>
    %51 = vector.extract_strided_slice %17 {offsets = [0, 8], sizes = [16, 8], strides = [1, 1]} : vector<16x32xf32> to vector<16x8xf32>
    %52 = vector.shape_cast %51 : vector<16x8xf32> to vector<2x8x8xf32>
    %53 = vector.extract_strided_slice %18 {offsets = [0, 8], sizes = [16, 8], strides = [1, 1]} : vector<16x32xf32> to vector<16x8xf32>
    %54 = vector.shape_cast %53 : vector<16x8xf32> to vector<2x8x8xf32>
    "tpu.trace_start"() <{level = 10 : i32, message = "bqd,bkd->bqk"}> : () -> ()
    %cst_22 = arith.constant dense<0.000000e+00> : vector<2x8x8xf32>
    %55 = tpu.matmul %50, %52, %cst_22 {dimension_numbers = #tpu.dot_dimension_numbers<[2], [2], [1], [1], [0, 0, 0, 1, 1, 1], [0], [0]>} : vector<2x8x8xf32>, vector<2x8x8xf32>, vector<2x8x8xf32> -> vector<2x8x8xf32>
    "tpu.trace_stop"() : () -> ()
    %cst_23 = arith.constant 0.353553385 : f32
    %56 = vector.broadcast %cst_23 : f32 to vector<2x8x8xf32>
    %57 = arith.mulf %55, %56 : vector<2x8x8xf32>
    %58 = vector.shape_cast %7 : vector<2x8xf32> to vector<2x1x8xf32>
    %59 = vector.broadcast %58 : vector<2x1x8xf32> to vector<2x8x8xf32>
    %60 = arith.addf %57, %59 : vector<2x8x8xf32>
    %cst_24 = arith.constant dense<0xFF800000> : vector<2x8xf32>
    %61 = vector.multi_reduction <maximumf>, %60, %cst_24 [2] : vector<2x8x8xf32> to vector<2x8xf32>
    %62 = vector.shape_cast %61 : vector<2x8xf32> to vector<2x8x1xf32>
    %63 = vector.broadcast %62 : vector<2x8x1xf32> to vector<2x8x8xf32>
    %64 = arith.subf %60, %63 : vector<2x8x8xf32>
    %65 = math.exp %64 : vector<2x8x8xf32>
    %cst_25 = arith.constant dense<0.000000e+00> : vector<2x8xf32>
    %66 = vector.multi_reduction <add>, %65, %cst_25 [2] : vector<2x8x8xf32> to vector<2x8xf32>
    %67 = vector.shape_cast %66 : vector<2x8xf32> to vector<2x8x1xf32>
    %68 = tpu.reciprocal %67 {approx = true} : vector<2x8x1xf32> -> vector<2x8x1xf32>
    %69 = vector.broadcast %68 : vector<2x8x1xf32> to vector<2x8x8xf32>
    %70 = arith.mulf %65, %69 : vector<2x8x8xf32>
    "tpu.trace_start"() <{level = 10 : i32, message = "bqk,bkd->bqd"}> : () -> ()
    %cst_26 = arith.constant dense<0.000000e+00> : vector<2x8x8xf32>
    %71 = tpu.matmul %70, %54, %cst_26 {dimension_numbers = #tpu.dot_dimension_numbers<[2], [1], [1], [2], [0, 0, 0, 1, 1, 2], [0], [0]>} : vector<2x8x8xf32>, vector<2x8x8xf32>, vector<2x8x8xf32> -> vector<2x8x8xf32>
    "tpu.trace_stop"() : () -> ()
    %72 = vector.shape_cast %71 : vector<2x8x8xf32> to vector<16x8xf32>
    %73 = vector.extract_strided_slice %20 {offsets = [8, 0], sizes = [8, 32], strides = [1, 1]} : vector<32x32xf32> to vector<8x32xf32>
    %cst_27 = arith.constant dense<0.000000e+00> : vector<16x32xf32>
    %74 = tpu.matmul %72, %73, %cst_27 {dimension_numbers = #tpu.dot_dimension_numbers<[1], [0], [0], [1], [0, 0, 1, 1], [], []>} : vector<16x8xf32>, vector<8x32xf32>, vector<16x32xf32> -> vector<16x32xf32>
    %75 = arith.addf %48, %74 : vector<16x32xf32>
    %76 = vector.extract_strided_slice %16 {offsets = [0, 16], sizes = [16, 8], strides = [1, 1]} : vector<16x32xf32> to vector<16x8xf32>
    %77 = vector.shape_cast %76 : vector<16x8xf32> to vector<2x8x8xf32>
    %78 = vector.extract_strided_slice %17 {offsets = [0, 16], sizes = [16, 8], strides = [1, 1]} : vector<16x32xf32> to vector<16x8xf32>
    %79 = vector.shape_cast %78 : vector<16x8xf32> to vector<2x8x8xf32>
    %80 = vector.extract_strided_slice %18 {offsets = [0, 16], sizes = [16, 8], strides = [1, 1]} : vector<16x32xf32> to vector<16x8xf32>
    %81 = vector.shape_cast %80 : vector<16x8xf32> to vector<2x8x8xf32>
    "tpu.trace_start"() <{level = 10 : i32, message = "bqd,bkd->bqk"}> : () -> ()
    %cst_28 = arith.constant dense<0.000000e+00> : vector<2x8x8xf32>
    %82 = tpu.matmul %77, %79, %cst_28 {dimension_numbers = #tpu.dot_dimension_numbers<[2], [2], [1], [1], [0, 0, 0, 1, 1, 1], [0], [0]>} : vector<2x8x8xf32>, vector<2x8x8xf32>, vector<2x8x8xf32> -> vector<2x8x8xf32>
    "tpu.trace_stop"() : () -> ()
    %cst_29 = arith.constant 0.353553385 : f32
    %83 = vector.broadcast %cst_29 : f32 to vector<2x8x8xf32>
    %84 = arith.mulf %82, %83 : vector<2x8x8xf32>
    %85 = vector.shape_cast %7 : vector<2x8xf32> to vector<2x1x8xf32>
    %86 = vector.broadcast %85 : vector<2x1x8xf32> to vector<2x8x8xf32>
    %87 = arith.addf %84, %86 : vector<2x8x8xf32>
    %cst_30 = arith.constant dense<0xFF800000> : vector<2x8xf32>
    %88 = vector.multi_reduction <maximumf>, %87, %cst_30 [2] : vector<2x8x8xf32> to vector<2x8xf32>
    %89 = vector.shape_cast %88 : vector<2x8xf32> to vector<2x8x1xf32>
    %90 = vector.broadcast %89 : vector<2x8x1xf32> to vector<2x8x8xf32>
    %91 = arith.subf %87, %90 : vector<2x8x8xf32>
    %92 = math.exp %91 : vector<2x8x8xf32>
    %cst_31 = arith.constant dense<0.000000e+00> : vector<2x8xf32>
    %93 = vector.multi_reduction <add>, %92, %cst_31 [2] : vector<2x8x8xf32> to vector<2x8xf32>
    %94 = vector.shape_cast %93 : vector<2x8xf32> to vector<2x8x1xf32>
    %95 = tpu.reciprocal %94 {approx = true} : vector<2x8x1xf32> -> vector<2x8x1xf32>
    %96 = vector.broadcast %95 : vector<2x8x1xf32> to vector<2x8x8xf32>
    %97 = arith.mulf %92, %96 : vector<2x8x8xf32>
    "tpu.trace_start"() <{level = 10 : i32, message = "bqk,bkd->bqd"}> : () -> ()
    %cst_32 = arith.constant dense<0.000000e+00> : vector<2x8x8xf32>
    %98 = tpu.matmul %97, %81, %cst_32 {dimension_numbers = #tpu.dot_dimension_numbers<[2], [1], [1], [2], [0, 0, 0, 1, 1, 2], [0], [0]>} : vector<2x8x8xf32>, vector<2x8x8xf32>, vector<2x8x8xf32> -> vector<2x8x8xf32>
    "tpu.trace_stop"() : () -> ()
    %99 = vector.shape_cast %98 : vector<2x8x8xf32> to vector<16x8xf32>
    %100 = vector.extract_strided_slice %20 {offsets = [16, 0], sizes = [8, 32], strides = [1, 1]} : vector<32x32xf32> to vector<8x32xf32>
    %cst_33 = arith.constant dense<0.000000e+00> : vector<16x32xf32>
    %101 = tpu.matmul %99, %100, %cst_33 {dimension_numbers = #tpu.dot_dimension_numbers<[1], [0], [0], [1], [0, 0, 1, 1], [], []>} : vector<16x8xf32>, vector<8x32xf32>, vector<16x32xf32> -> vector<16x32xf32>
    %102 = arith.addf %75, %101 : vector<16x32xf32>
    %103 = vector.extract_strided_slice %16 {offsets = [0, 24], sizes = [16, 8], strides = [1, 1]} : vector<16x32xf32> to vector<16x8xf32>
    %104 = vector.shape_cast %103 : vector<16x8xf32> to vector<2x8x8xf32>
    %105 = vector.extract_strided_slice %17 {offsets = [0, 24], sizes = [16, 8], strides = [1, 1]} : vector<16x32xf32> to vector<16x8xf32>
    %106 = vector.shape_cast %105 : vector<16x8xf32> to vector<2x8x8xf32>
    %107 = vector.extract_strided_slice %18 {offsets = [0, 24], sizes = [16, 8], strides = [1, 1]} : vector<16x32xf32> to vector<16x8xf32>
    %108 = vector.shape_cast %107 : vector<16x8xf32> to vector<2x8x8xf32>
    "tpu.trace_start"() <{level = 10 : i32, message = "bqd,bkd->bqk"}> : () -> ()
    %cst_34 = arith.constant dense<0.000000e+00> : vector<2x8x8xf32>
    %109 = tpu.matmul %104, %106, %cst_34 {dimension_numbers = #tpu.dot_dimension_numbers<[2], [2], [1], [1], [0, 0, 0, 1, 1, 1], [0], [0]>} : vector<2x8x8xf32>, vector<2x8x8xf32>, vector<2x8x8xf32> -> vector<2x8x8xf32>
    "tpu.trace_stop"() : () -> ()
    %cst_35 = arith.constant 0.353553385 : f32
    %110 = vector.broadcast %cst_35 : f32 to vector<2x8x8xf32>
    %111 = arith.mulf %109, %110 : vector<2x8x8xf32>
    %112 = vector.shape_cast %7 : vector<2x8xf32> to vector<2x1x8xf32>
    %113 = vector.broadcast %112 : vector<2x1x8xf32> to vector<2x8x8xf32>
    %114 = arith.addf %111, %113 : vector<2x8x8xf32>
    %cst_36 = arith.constant dense<0xFF800000> : vector<2x8xf32>
    %115 = vector.multi_reduction <maximumf>, %114, %cst_36 [2] : vector<2x8x8xf32> to vector<2x8xf32>
    %116 = vector.shape_cast %115 : vector<2x8xf32> to vector<2x8x1xf32>
    %117 = vector.broadcast %116 : vector<2x8x1xf32> to vector<2x8x8xf32>
    %118 = arith.subf %114, %117 : vector<2x8x8xf32>
    %119 = math.exp %118 : vector<2x8x8xf32>
    %cst_37 = arith.constant dense<0.000000e+00> : vector<2x8xf32>
    %120 = vector.multi_reduction <add>, %119, %cst_37 [2] : vector<2x8x8xf32> to vector<2x8xf32>
    %121 = vector.shape_cast %120 : vector<2x8xf32> to vector<2x8x1xf32>
    %122 = tpu.reciprocal %121 {approx = true} : vector<2x8x1xf32> -> vector<2x8x1xf32>
    %123 = vector.broadcast %122 : vector<2x8x1xf32> to vector<2x8x8xf32>
    %124 = arith.mulf %119, %123 : vector<2x8x8xf32>
    "tpu.trace_start"() <{level = 10 : i32, message = "bqk,bkd->bqd"}> : () -> ()
    %cst_38 = arith.constant dense<0.000000e+00> : vector<2x8x8xf32>
    %125 = tpu.matmul %124, %108, %cst_38 {dimension_numbers = #tpu.dot_dimension_numbers<[2], [1], [1], [2], [0, 0, 0, 1, 1, 2], [0], [0]>} : vector<2x8x8xf32>, vector<2x8x8xf32>, vector<2x8x8xf32> -> vector<2x8x8xf32>
    "tpu.trace_stop"() : () -> ()
    %126 = vector.shape_cast %125 : vector<2x8x8xf32> to vector<16x8xf32>
    %127 = vector.extract_strided_slice %20 {offsets = [24, 0], sizes = [8, 32], strides = [1, 1]} : vector<32x32xf32> to vector<8x32xf32>
    %cst_39 = arith.constant dense<0.000000e+00> : vector<16x32xf32>
    %128 = tpu.matmul %126, %127, %cst_39 {dimension_numbers = #tpu.dot_dimension_numbers<[1], [0], [0], [1], [0, 0, 1, 1], [], []>} : vector<16x8xf32>, vector<8x32xf32>, vector<16x32xf32> -> vector<16x32xf32>
    %129 = arith.addf %102, %128 : vector<16x32xf32>
    %c0_40 = arith.constant 0 : index
    %c0_41 = arith.constant 0 : index
    %c0_42 = arith.constant 0 : index
    %130 = vector.load %arg10[%c0_40, %c0_41, %c0_42] : memref<1x1x32xf32, #tpu.memory_space<vmem>>, vector<1x1x32xf32>
    %131 = vector.shape_cast %130 : vector<1x1x32xf32> to vector<1x32xf32>
    %132 = vector.broadcast %131 : vector<1x32xf32> to vector<16x32xf32>
    %133 = arith.addf %129, %132 : vector<16x32xf32>
    %134 = arith.addf %133, %8 : vector<16x32xf32>
    %c0_43 = arith.constant 0 : index
    %c0_44 = arith.constant 0 : index
    %c0_45 = arith.constant 0 : index
    %135 = vector.load %arg11[%c0_43, %c0_44, %c0_45] : memref<1x1x32xf32, #tpu.memory_space<vmem>>, vector<1x1x32xf32>
    %136 = vector.shape_cast %135 : vector<1x1x32xf32> to vector<1x32xf32>
    %c0_46 = arith.constant 0 : index
    %c0_47 = arith.constant 0 : index
    %c0_48 = arith.constant 0 : index
    %137 = vector.load %arg12[%c0_46, %c0_47, %c0_48] : memref<1x1x32xf32, #tpu.memory_space<vmem>>, vector<1x1x32xf32>
    %138 = vector.shape_cast %137 : vector<1x1x32xf32> to vector<1x32xf32>
    %cst_49 = arith.constant dense<0.000000e+00> : vector<16xf32>
    %139 = vector.multi_reduction <add>, %134, %cst_49 [1] : vector<16x32xf32> to vector<16xf32>
    %140 = vector.shape_cast %139 : vector<16xf32> to vector<16x1xf32>
    %cst_50 = arith.constant 3.200000e+01 : f32
    %141 = vector.broadcast %cst_50 : f32 to vector<16x1xf32>
    %142 = arith.divf %140, %141 : vector<16x1xf32>
    %143 = vector.broadcast %142 : vector<16x1xf32> to vector<16x32xf32>
    %144 = arith.subf %134, %143 : vector<16x32xf32>
    %145 = arith.mulf %144, %144 : vector<16x32xf32>
    %cst_51 = arith.constant dense<0.000000e+00> : vector<16xf32>
    %146 = vector.multi_reduction <add>, %145, %cst_51 [1] : vector<16x32xf32> to vector<16xf32>
    %147 = vector.shape_cast %146 : vector<16xf32> to vector<16x1xf32>
    %cst_52 = arith.constant 3.200000e+01 : f32
    %148 = vector.broadcast %cst_52 : f32 to vector<16x1xf32>
    %149 = arith.divf %147, %148 : vector<16x1xf32>
    %150 = vector.broadcast %142 : vector<16x1xf32> to vector<16x32xf32>
    %151 = arith.subf %134, %150 : vector<16x32xf32>
    %cst_53 = arith.constant 9.99999996E-13 : f32
    %152 = vector.broadcast %cst_53 : f32 to vector<16x1xf32>
    %153 = arith.addf %149, %152 : vector<16x1xf32>
    %154 = math.rsqrt %153 : vector<16x1xf32>
    %155 = vector.broadcast %154 : vector<16x1xf32> to vector<16x32xf32>
    %156 = arith.mulf %151, %155 : vector<16x32xf32>
    %157 = vector.broadcast %136 : vector<1x32xf32> to vector<16x32xf32>
    %158 = arith.mulf %156, %157 : vector<16x32xf32>
    %159 = vector.broadcast %138 : vector<1x32xf32> to vector<16x32xf32>
    %160 = arith.addf %158, %159 : vector<16x32xf32>
    %c0_54 = arith.constant 0 : index
    %c0_55 = arith.constant 0 : index
    %c0_56 = arith.constant 0 : index
    %161 = vector.load %arg13[%c0_54, %c0_55, %c0_56] : memref<1x32x64xf32, #tpu.memory_space<vmem>>, vector<1x32x64xf32>
    %162 = vector.shape_cast %161 : vector<1x32x64xf32> to vector<32x64xf32>
    %cst_57 = arith.constant dense<0.000000e+00> : vector<16x64xf32>
    %163 = tpu.matmul %160, %162, %cst_57 {dimension_numbers = #tpu.dot_dimension_numbers<[1], [0], [0], [1], [0, 0, 1, 1], [], []>} : vector<16x32xf32>, vector<32x64xf32>, vector<16x64xf32> -> vector<16x64xf32>
    %c0_58 = arith.constant 0 : index
    %c0_59 = arith.constant 0 : index
    %c0_60 = arith.constant 0 : index
    %164 = vector.load %arg14[%c0_58, %c0_59, %c0_60] : memref<1x1x64xf32, #tpu.memory_space<vmem>>, vector<1x1x64xf32>
    %165 = vector.shape_cast %164 : vector<1x1x64xf32> to vector<1x64xf32>
    %166 = vector.broadcast %165 : vector<1x64xf32> to vector<16x64xf32>
    %167 = arith.addf %163, %166 : vector<16x64xf32>
    %168 = arith.mulf %167, %167 : vector<16x64xf32>
    %169 = arith.mulf %167, %168 : vector<16x64xf32>
    %cst_61 = arith.constant 4.471500e-02 : f32
    %170 = vector.broadcast %cst_61 : f32 to vector<16x64xf32>
    %171 = arith.mulf %170, %169 : vector<16x64xf32>
    %172 = arith.addf %167, %171 : vector<16x64xf32>
    %cst_62 = arith.constant 0.797884583 : f32
    %173 = vector.broadcast %cst_62 : f32 to vector<16x64xf32>
    %174 = arith.mulf %173, %172 : vector<16x64xf32>
    %175 = math.tanh %174 : vector<16x64xf32>
    %cst_63 = arith.constant 1.000000e+00 : f32
    %176 = vector.broadcast %cst_63 : f32 to vector<16x64xf32>
    %177 = arith.addf %176, %175 : vector<16x64xf32>
    %cst_64 = arith.constant 5.000000e-01 : f32
    %178 = vector.broadcast %cst_64 : f32 to vector<16x64xf32>
    %179 = arith.mulf %178, %177 : vector<16x64xf32>
    %180 = arith.mulf %167, %179 : vector<16x64xf32>
    %c0_65 = arith.constant 0 : index
    %c0_66 = arith.constant 0 : index
    %c0_67 = arith.constant 0 : index
    %181 = vector.load %arg15[%c0_65, %c0_66, %c0_67] : memref<1x64x32xf32, #tpu.memory_space<vmem>>, vector<1x64x32xf32>
    %182 = vector.shape_cast %181 : vector<1x64x32xf32> to vector<64x32xf32>
    %cst_68 = arith.constant dense<0.000000e+00> : vector<16x32xf32>
    %183 = tpu.matmul %180, %182, %cst_68 {dimension_numbers = #tpu.dot_dimension_numbers<[1], [0], [0], [1], [0, 0, 1, 1], [], []>} : vector<16x64xf32>, vector<64x32xf32>, vector<16x32xf32> -> vector<16x32xf32>
    %c0_69 = arith.constant 0 : index
    %c0_70 = arith.constant 0 : index
    %c0_71 = arith.constant 0 : index
    %184 = vector.load %arg16[%c0_69, %c0_70, %c0_71] : memref<1x1x32xf32, #tpu.memory_space<vmem>>, vector<1x1x32xf32>
    %185 = vector.shape_cast %184 : vector<1x1x32xf32> to vector<1x32xf32>
    %186 = vector.broadcast %185 : vector<1x32xf32> to vector<16x32xf32>
    %187 = arith.addf %183, %186 : vector<16x32xf32>
    %188 = arith.addf %187, %160 : vector<16x32xf32>
    %c0_72 = arith.constant 0 : index
    %c0_73 = arith.constant 0 : index
    %c0_74 = arith.constant 0 : index
    %189 = vector.load %arg17[%c0_72, %c0_73, %c0_74] : memref<1x1x32xf32, #tpu.memory_space<vmem>>, vector<1x1x32xf32>
    %190 = vector.shape_cast %189 : vector<1x1x32xf32> to vector<1x32xf32>
    %c0_75 = arith.constant 0 : index
    %c0_76 = arith.constant 0 : index
    %c0_77 = arith.constant 0 : index
    %191 = vector.load %arg18[%c0_75, %c0_76, %c0_77] : memref<1x1x32xf32, #tpu.memory_space<vmem>>, vector<1x1x32xf32>
    %192 = vector.shape_cast %191 : vector<1x1x32xf32> to vector<1x32xf32>
    %cst_78 = arith.constant dense<0.000000e+00> : vector<16xf32>
    %193 = vector.multi_reduction <add>, %188, %cst_78 [1] : vector<16x32xf32> to vector<16xf32>
    %194 = vector.shape_cast %193 : vector<16xf32> to vector<16x1xf32>
    %cst_79 = arith.constant 3.200000e+01 : f32
    %195 = vector.broadcast %cst_79 : f32 to vector<16x1xf32>
    %196 = arith.divf %194, %195 : vector<16x1xf32>
    %197 = vector.broadcast %196 : vector<16x1xf32> to vector<16x32xf32>
    %198 = arith.subf %188, %197 : vector<16x32xf32>
    %199 = arith.mulf %198, %198 : vector<16x32xf32>
    %cst_80 = arith.constant dense<0.000000e+00> : vector<16xf32>
    %200 = vector.multi_reduction <add>, %199, %cst_80 [1] : vector<16x32xf32> to vector<16xf32>
    %201 = vector.shape_cast %200 : vector<16xf32> to vector<16x1xf32>
    %cst_81 = arith.constant 3.200000e+01 : f32
    %202 = vector.broadcast %cst_81 : f32 to vector<16x1xf32>
    %203 = arith.divf %201, %202 : vector<16x1xf32>
    %204 = vector.broadcast %196 : vector<16x1xf32> to vector<16x32xf32>
    %205 = arith.subf %188, %204 : vector<16x32xf32>
    %cst_82 = arith.constant 9.99999996E-13 : f32
    %206 = vector.broadcast %cst_82 : f32 to vector<16x1xf32>
    %207 = arith.addf %203, %206 : vector<16x1xf32>
    %208 = math.rsqrt %207 : vector<16x1xf32>
    %209 = vector.broadcast %208 : vector<16x1xf32> to vector<16x32xf32>
    %210 = arith.mulf %205, %209 : vector<16x32xf32>
    %211 = vector.broadcast %190 : vector<1x32xf32> to vector<16x32xf32>
    %212 = arith.mulf %210, %211 : vector<16x32xf32>
    %213 = vector.broadcast %192 : vector<1x32xf32> to vector<16x32xf32>
    %214 = arith.addf %212, %213 : vector<16x32xf32>
    %c0_83 = arith.constant 0 : index
    %c0_84 = arith.constant 0 : index
    %215 = vector.load %arg22[%c0_83, %c0_84] : memref<16x32xf32, #tpu.memory_space<vmem>>, vector<16x32xf32>
    tpu.vector_store %arg22[%c0_83, %c0_84], %214 {strides = array<i32>} : memref<16x32xf32, #tpu.memory_space<vmem>>, vector<16x32xf32>,
    %c1_i32 = arith.constant 1 : i32
    %216 = arith.cmpi eq, %arg0, %c1_i32 : i32
    %217 = arith.extui %216 : i1 to i32
    %c0_i32_85 = arith.constant 0 : i32
    %218 = arith.cmpi ne, %217, %c0_i32_85 : i32
    scf.if %218 {
      %219 = vector.shape_cast %214 : vector<16x32xf32> to vector<2x8x32xf32>
      %220 = vector.shape_cast %3 : vector<2x8xf32> to vector<2x8x1xf32>
      %221 = vector.broadcast %220 : vector<2x8x1xf32> to vector<2x8x32xf32>
      %222 = arith.mulf %219, %221 : vector<2x8x32xf32>
      %cst_86 = arith.constant dense<0.000000e+00> : vector<2x32xf32>
      %223 = vector.multi_reduction <add>, %222, %cst_86 [1] : vector<2x8x32xf32> to vector<2x32xf32>
      %cst_87 = arith.constant dense<0.000000e+00> : vector<2x1xf32>
      %224 = vector.multi_reduction <add>, %220, %cst_87 [1] : vector<2x8x1xf32> to vector<2x1xf32>
      %cst_88 = arith.constant 9.99999971E-10 : f32
      %225 = vector.broadcast %cst_88 : f32 to vector<2x1xf32>
      %226 = arith.maximumf %224, %225 : vector<2x1xf32>
      %227 = tpu.reciprocal %226 {approx = true} : vector<2x1xf32> -> vector<2x1xf32>
      %228 = vector.broadcast %227 : vector<2x1xf32> to vector<2x32xf32>
      %229 = arith.mulf %223, %228 : vector<2x32xf32>
      %c0_89 = arith.constant 0 : index
      %c0_90 = arith.constant 0 : index
      %230 = vector.load %arg19[%c0_89, %c0_90] : memref<32x128xf32, #tpu.memory_space<vmem>>, vector<32x128xf32>
      %cst_91 = arith.constant dense<0.000000e+00> : vector<2x128xf32>
      %231 = tpu.matmul %229, %230, %cst_91 {dimension_numbers = #tpu.dot_dimension_numbers<[1], [0], [0], [1], [0, 0, 1, 1], [], []>} : vector<2x32xf32>, vector<32x128xf32>, vector<2x128xf32> -> vector<2x128xf32>
      %c0_92 = arith.constant 0 : index
      %c0_93 = arith.constant 0 : index
      %232 = vector.load %arg20[%c0_92, %c0_93] : memref<1x128xf32, #tpu.memory_space<vmem>>, vector<1x128xf32>
      %233 = vector.broadcast %232 : vector<1x128xf32> to vector<2x128xf32>
      %234 = arith.addf %231, %233 : vector<2x128xf32>
      %c0_94 = arith.constant 0 : index
      %c0_95 = arith.constant 0 : index
      %235 = vector.load %arg21[%c0_94, %c0_95] : memref<2x128xf32, #tpu.memory_space<vmem>>, vector<2x128xf32>
      tpu.vector_store %arg21[%c0_94, %c0_95], %234 {strides = array<i32>} : memref<2x128xf32, #tpu.memory_space<vmem>>, vector<2x128xf32>,
    } else {
    }
    return
  }
  func.func @transform_0(%arg0: i32) -> (i32, i32, i32) {
    %c0_i32 = arith.constant 0 : i32
    %c0_i32_0 = arith.constant 0 : i32
    %c0_i32_1 = arith.constant 0 : i32
    %c0_i32_2 = arith.constant 0 : i32
    return %c0_i32, %c0_i32_0, %c0_i32_1 : i32, i32, i32
  }
  func.func @transform_1(%arg0: i32) -> (i32, i32, i32) {
    %c0_i32 = arith.constant 0 : i32
    %c0_i32_0 = arith.constant 0 : i32
    %c0_i32_1 = arith.constant 0 : i32
    %c0_i32_2 = arith.constant 0 : i32
    return %c0_i32, %c0_i32_0, %c0_i32_1 : i32, i32, i32
  }
  func.func @transform_2(%arg0: i32) -> (i32, i32, i32) {
    %c0_i32 = arith.constant 0 : i32
    %c0_i32_0 = arith.constant 0 : i32
    %c0_i32_1 = arith.constant 0 : i32
    %c0_i32_2 = arith.constant 0 : i32
    return %c0_i32, %c0_i32_0, %c0_i32_1 : i32, i32, i32
  }
  func.func @transform_3(%arg0: i32) -> (i32, i32) {
    %c0_i32 = arith.constant 0 : i32
    %c0_i32_0 = arith.constant 0 : i32
    %c0_i32_1 = arith.constant 0 : i32
    return %c0_i32, %c0_i32_0 : i32, i32
  }
  func.func @transform_4(%arg0: i32) -> (i32, i32) {
    %c0_i32 = arith.constant 0 : i32
    %c0_i32_0 = arith.constant 0 : i32
    %c0_i32_1 = arith.constant 0 : i32
    return %c0_i32, %c0_i32_0 : i32, i32
  }
  func.func @transform_5(%arg0: i32) -> (i32, i32) {
    %c0_i32 = arith.constant 0 : i32
    %c0_i32_0 = arith.constant 0 : i32
    %c0_i32_1 = arith.constant 0 : i32
    return %c0_i32, %c0_i32_0 : i32, i32
  }
  func.func @transform_6(%arg0: i32) -> (i32, i32, i32) {
    %c0_i32 = arith.constant 0 : i32
    %c0_i32_0 = arith.constant 0 : i32
    %c0_i32_1 = arith.constant 0 : i32
    return %arg0, %c0_i32, %c0_i32_0 : i32, i32, i32
  }
  func.func @transform_7(%arg0: i32) -> (i32, i32, i32) {
    %c0_i32 = arith.constant 0 : i32
    %c0_i32_0 = arith.constant 0 : i32
    %c0_i32_1 = arith.constant 0 : i32
    return %arg0, %c0_i32, %c0_i32_0 : i32, i32, i32
  }
  func.func @transform_8(%arg0: i32) -> (i32, i32, i32) {
    %c0_i32 = arith.constant 0 : i32
    %c0_i32_0 = arith.constant 0 : i32
    %c0_i32_1 = arith.constant 0 : i32
    return %arg0, %c0_i32, %c0_i32_0 : i32, i32, i32
  }
  func.func @transform_9(%arg0: i32) -> (i32, i32, i32) {
    %c0_i32 = arith.constant 0 : i32
    %c0_i32_0 = arith.constant 0 : i32
    %c0_i32_1 = arith.constant 0 : i32
    return %arg0, %c0_i32, %c0_i32_0 : i32, i32, i32
  }
  func.func @transform_10(%arg0: i32) -> (i32, i32, i32) {
    %c0_i32 = arith.constant 0 : i32
    %c0_i32_0 = arith.constant 0 : i32
    %c0_i32_1 = arith.constant 0 : i32
    return %arg0, %c0_i32, %c0_i32_0 : i32, i32, i32
  }
  func.func @transform_11(%arg0: i32) -> (i32, i32, i32) {
    %c0_i32 = arith.constant 0 : i32
    %c0_i32_0 = arith.constant 0 : i32
    %c0_i32_1 = arith.constant 0 : i32
    return %arg0, %c0_i32, %c0_i32_0 : i32, i32, i32
  }
  func.func @transform_12(%arg0: i32) -> (i32, i32, i32) {
    %c0_i32 = arith.constant 0 : i32
    %c0_i32_0 = arith.constant 0 : i32
    %c0_i32_1 = arith.constant 0 : i32
    return %arg0, %c0_i32, %c0_i32_0 : i32, i32, i32
  }
  func.func @transform_13(%arg0: i32) -> (i32, i32, i32) {
    %c0_i32 = arith.constant 0 : i32
    %c0_i32_0 = arith.constant 0 : i32
    %c0_i32_1 = arith.constant 0 : i32
    return %arg0, %c0_i32, %c0_i32_0 : i32, i32, i32
  }
  func.func @transform_14(%arg0: i32) -> (i32, i32, i32) {
    %c0_i32 = arith.constant 0 : i32
    %c0_i32_0 = arith.constant 0 : i32
    %c0_i32_1 = arith.constant 0 : i32
    return %arg0, %c0_i32, %c0_i32_0 : i32, i32, i32
  }
  func.func @transform_15(%arg0: i32) -> (i32, i32, i32) {
    %c0_i32 = arith.constant 0 : i32
    %c0_i32_0 = arith.constant 0 : i32
    %c0_i32_1 = arith.constant 0 : i32
    return %arg0, %c0_i32, %c0_i32_0 : i32, i32, i32
  }
  func.func @transform_16(%arg0: i32) -> (i32, i32, i32) {
    %c0_i32 = arith.constant 0 : i32
    %c0_i32_0 = arith.constant 0 : i32
    %c0_i32_1 = arith.constant 0 : i32
    return %arg0, %c0_i32, %c0_i32_0 : i32, i32, i32
  }
  func.func @transform_17(%arg0: i32) -> (i32, i32, i32) {
    %c0_i32 = arith.constant 0 : i32
    %c0_i32_0 = arith.constant 0 : i32
    %c0_i32_1 = arith.constant 0 : i32
    return %arg0, %c0_i32, %c0_i32_0 : i32, i32, i32
  }
  func.func @transform_18(%arg0: i32) -> (i32, i32) {
    %c0_i32 = arith.constant 0 : i32
    %c0_i32_0 = arith.constant 0 : i32
    %c0_i32_1 = arith.constant 0 : i32
    return %c0_i32, %c0_i32_0 : i32, i32
  }
  func.func @transform_19(%arg0: i32) -> (i32, i32) {
    %c0_i32 = arith.constant 0 : i32
    %c0_i32_0 = arith.constant 0 : i32
    %c0_i32_1 = arith.constant 0 : i32
    return %c0_i32, %c0_i32_0 : i32, i32
  }
  func.func @transform_20(%arg0: i32) -> (i32, i32) {
    %c0_i32 = arith.constant 0 : i32
    %c0_i32_0 = arith.constant 0 : i32
    %c0_i32_1 = arith.constant 0 : i32
    return %c0_i32, %c0_i32_0 : i32, i32
  }
}

</mosaic_0001>

<bundles_post_ra>
// kernel: bert_regressor_forward.1
= control target key start
LH: loop header
LB: loop body
LE: loop exit
PB: predicated region body
PF: predicated region fallthrough
CT: control target
= control target key end

     0   :  { %s2688_s0 = inlined_call_operand.vmem [shape: f32[2,8,32], index: 0, kind: input, shape index: {}]   ;;  %s2689_s1 = inlined_call_operand.vmem [shape: f32[1,8,32], index: 1, kind: input, shape index: {}]   ;;  %s2690_s2 = inlined_call_operand.vmem [shape: f32[1,1,32], index: 2, kind: input, shape index: {}]   ;;  %s2691_s3 = inlined_call_operand.vmem [shape: f32[1,32], index: 3, kind: input, shape index: {}]   ;;  %s2692_s4 = inlined_call_operand.vmem [shape: f32[1,32], index: 4, kind: input, shape index: {}]   ;;  %s2693_s5 = inlined_call_operand.vmem [shape: f32[2,8], index: 5, kind: input, shape index: {}]   ;;  %s2694_s6 = inlined_call_operand.vmem [shape: f32[2,32,96], index: 6, kind: input, shape index: {}]   ;;  %s2695_s7 = inlined_call_operand.vmem [shape: f32[2,1,96], index: 7, kind: input, shape index: {}]   ;;  %s2696_s8 = inlined_call_operand.vmem [shape: f32[2,32,32], index: 8, kind: input, shape index: {}]   ;;  %s2697_s9 = inlined_call_operand.vmem [shape: f32[2,1,32], index: 9, kind: input, shape index: {}]   ;;  %s2698_s10 = inlined_call_operand.vmem [shape: f32[2,1,32], index: 10, kind: input, shape index: {}]   ;;  %s2699_s11 = inlined_call_operand.vmem [shape: f32[2,1,32], index: 11, kind: input, shape index: {}]   ;;  %s2700_s12 = inlined_call_operand.vmem [shape: f32[2,32,64], index: 12, kind: input, shape index: {}]   ;;  %s2701_s13 = inlined_call_operand.vmem [shape: f32[2,1,64], index: 13, kind: input, shape index: {}]   ;;  %s2702_s14 = inlined_call_operand.vmem [shape: f32[2,64,32], index: 14, kind: input, shape index: {}]   ;;  %s2703_s15 = inlined_call_operand.vmem [shape: f32[2,1,32], index: 15, kind: input, shape index: {}]   ;;  %s2704_s16 = inlined_call_operand.vmem [shape: f32[2,1,32], index: 16, kind: input, shape index: {}]   ;;  %s2705_s17 = inlined_call_operand.vmem [shape: f32[2,1,32], index: 17, kind: input, shape index: {}]   ;;  %s2706_s18 = inlined_call_operand.vmem [shape: f32[32,128], index: 18, kind: input, shape index: {}]   ;;  %s2707_s19 = inlined_call_operand.vmem [shape: f32[1,128], index: 19, kind: input, shape index: {}]   ;;  %s2708_s20 = inlined_call_operand.hbm [shape: f32[2,128], index: 20, kind: output, shape index: {}]  }
   0x1   :  { %2713 = sst [smem:[#allocation8_spill]] %s2688_s0 }
   0x2   :  { %2714 = sst [smem:[#allocation9_spill]] %s2689_s1 }
   0x3   :  { %2715 = sst [smem:[#allocation10_spill]] %s2690_s2 }
   0x4   :  { %2716 = sst [smem:[#allocation11_spill]] %s2691_s3 }
   0x5   :  { %2717 = sst [smem:[#allocation12_spill]] %s2692_s4 }
   0x6   :  { %2718 = sst [smem:[#allocation13_spill]] %s2694_s6 }
   0x7   :  { %2719 = sst [smem:[#allocation14_spill]] %s2696_s8 }
   0x8   :  { %2720 = sst [smem:[#allocation15_spill]] %s2706_s18 }
   0x9   :  { %2721 = sst [smem:[#allocation16_spill]] %s2707_s19 }
   0xa   :  { %2722 = sst [smem:[#allocation17_spill]] %s2708_s20 }
   0xb   :  { %25 = vsyncpa [#allocation4], 0  ;;  %s2365_s1 = smov 0  }
   0xc LB: > { %2723 = sst [smem:[#allocation6_spill]] %s2244_s1  ;;  %s2371_s22 = sadd.s32 4294967295, %s2244_s1   ;;  %s2244_s1 = sphi %s2365_s1, %s31_s1  }
   0xd   : > { %p2051_p0 = scmp.ge.s32.totalorder %s2244_s1, 1  ;;  %p652_p1 = scmp.lt.s32.totalorder %s2244_s1, 3 }
   0xf   : > { %p653_p2 = pnand %p2051_p0, %p652_p1 }
  0x11   : > { %656 = sbr.rel (%p653_p2) target bundleno = 3175 (0xc67), region = 100 }
  0x16   : > { %p744_p3 = scmp.lt.s32.totalorder %s2371_s22, 1  ;;  %s2724_s6 = sld [smem:[#allocation13_spill]] }
  0x17   : > { %s2725_s8 = sld [smem:[#allocation14_spill]]  ;;  %p2060_p4 = scmp.ne.s32.totalorder %s2371_s22, 0 }
  0x18   : > { %s2377_s23 = scalar_select %p744_p3, %s2371_s22, 1 }
  0x19   : > { %s2727_s0 = sld [smem:[#allocation8_spill]] (!%p2060_p4) }
  0x1a   : > { %s2105_s24 = sshll.u32 %s2377_s23, 5  ;;  %s781_s2 = scalar_lea.vmem %s2703_s15, %s2377_s23 }
  0x1b   : > { %s787_s18 = scalar_lea.vmem %s2705_s17, %s2377_s23  ;;  %791 = sbr.rel (%p2060_p4) target bundleno = 317 (0x13d), region = 104 }
  0x1c   : > { %s2387_s28 = scalar_lea.vmem %s2724_s6, %s2105_s24  ;;  %s2409_s6 = scalar_lea.vmem %s2700_s12, %s2105_s24 }
  0x1d   : > { %s2392_s30 = scalar_lea.vmem %s2725_s8, %s2105_s24  ;;  %s2728_s8 = sld [smem:[#allocation9_spill]] (!%p2060_p4) }
  0x1e   : > { %2726 = sst [smem:[#allocation7_spill]] %s2392_s30  ;;  %s2108_s30 = sshll.u32 %s2377_s23, 6 }
  0x1f   : > { %s2419_s1 = scalar_lea.vmem %s2702_s14, %s2108_s30  ;;  %s2729_s3 = sld [smem:[#allocation10_spill]] (!%p2060_p4) }
  0x20   : > { %v792_v0 = vld [vmem:[%s2727_s0] sm:$0xff]  ;;  %v793_v4 = vld [vmem:[%s2727_s0 + $0x8] sm:$0xff]  ;;  %vm805_vm0 = vcmask 261120   ;;  %v2246_v10 = vmov 32.0   ;;  %s2730_s24 = sld [smem:[#allocation11_spill]] }
  0x21   : > { %2140 = vrcp.f32 %v2246_v10  ;;  %s2731_s29 = sld [smem:[#allocation12_spill]] }
  0x23   : > { %v794_v1 = vld [vmem:[%s2728_s8] sm:$0xff] }
  0x24   : > { %v795_v2 = vadd.f32 %v794_v1, %v792_v0  ;;  %v796_v6 = vadd.f32 %v794_v1, %v793_v4 }
  0x25   : > { %v2137_v3 = vld [vmem:[%s2729_s3] ss:$0 sm:$0xff] }
  0x26   : > { %v801_v5 = vadd.f32 %v2137_v3, %v795_v2  ;;  %v802_v8 = vadd.f32 %v2137_v3, %v796_v6  ;;  %v2138_v41 = vld [vmem:[%s2730_s24] ss:$0 sm:$0xff] }
  0x27   : > { %v2141_v11 = vpop.eup %2140  ;;  %v2139_v44 = vld [vmem:[%s2731_s29] ss:$0 sm:$0xff] }
  0x28   : > { %v806_v7 = vsel %vm805_vm0, %v801_v5, 0.0  ;;  %v809_v9 = vsel %vm805_vm0, %v802_v8, 0.0  ;;  %v813_v12 = vmul.f32 32.0, %v2141_v11  ;;  %vm817_vm1 = vweird.f32 %v2141_v11 }
  0x29   : > { %807 = vadd.xlane.f32.xlu0 %v806_v7 }
  0x2a   : > { %v814_v13 = vsub.f32 1.0, %v813_v12 }
  0x2c   : > { %v815_v14 = vmul.f32 %v2141_v11, %v814_v13 }
  0x2e   : > { %v816_v15 = vadd.f32 %v2141_v11, %v815_v14 }
  0x30   : > { %v818_v16 = vsel %vm817_vm1, %v2141_v11, %v816_v15 }
  0x31   : > { %810 = vadd.xlane.f32.xlu0 %v809_v9 }
  0x9c   : > { %v808_v17 = vpop.xlane.xlu0 %807 }
  0x9d   : > { %v819_v18 = vmul.f32 %v818_v16, %v808_v17 }
  0x9f   : > { %v821_v19 = vsub.f32 %v801_v5, %v819_v18 }
  0xa1   : > { %v823_v20 = vmul.f32 %v821_v19, %v821_v19 }
  0xa3   : > { %v825_v21 = vsel %vm805_vm0, %v823_v20, 0.0 }
  0xa4   : > { %826 = vadd.xlane.f32.xlu1 %v825_v21  ;;  %v811_v22 = vpop.xlane.xlu0 %810 }
  0xa5   : > { %v820_v23 = vmul.f32 %v818_v16, %v811_v22 }
  0xa7   : > { %v822_v24 = vsub.f32 %v802_v8, %v820_v23 }
  0xa9   : > { %v824_v25 = vmul.f32 %v822_v24, %v822_v24 }
  0xab   : > { %v828_v26 = vsel %vm805_vm0, %v824_v25, 0.0 }
  0xac   : > { %829 = vadd.xlane.f32.xlu1 %v828_v26 }
 0x117   : > { %v827_v27 = vpop.xlane.xlu1 %826 }
 0x118   : > { %v831_v28 = vmul.f32 %v827_v27, %v818_v16 }
 0x11a   : > { %v833_v29 = vadd.f32 1e-12, %v831_v28 }
 0x11c   : > { %2142 = vrsqrt.f32 %v833_v29  ;;  %vm841_vm3 = vweird.f32 %v833_v29 }
 0x11f   : > { %v830_v30 = vpop.xlane.xlu1 %829 }
 0x120   : > { %v832_v31 = vmul.f32 %v830_v30, %v818_v16 }
 0x122   : > { %v2143_v32 = vpop.eup %2142  ;;  %v834_v33 = vadd.f32 1e-12, %v832_v31 }
 0x123   : > { %v836_v34 = vmul.f32 %v2143_v32, %v833_v29  ;;  %vm842_vm2 = vweird.f32 %v2143_v32 }
 0x124   : > { %2144 = vrsqrt.f32 %v834_v33  ;;  %vm843_vm4 = vmor %vm841_vm3, %vm842_vm2  ;;  %vm851_vm6 = vweird.f32 %v834_v33 }
 0x125   : > { %v837_v35 = vmul.f32 %v2143_v32, %v836_v34 }
 0x127   : > { %v838_v36 = vmul.f32 0.5, %v837_v35 }
 0x129   : > { %v839_v37 = vsub.f32 1.5, %v838_v36 }
 0x12a   : > { %v2145_v38 = vpop.eup %2144 }
 0x12b   : > { %v840_v39 = vmul.f32 %v2143_v32, %v839_v37  ;;  %v846_v40 = vmul.f32 %v2145_v38, %v834_v33  ;;  %vm852_vm5 = vweird.f32 %v2145_v38 }
 0x12c   : > { %vm853_vm7 = vmor %vm851_vm6, %vm852_vm5 }
 0x12d   : > { %v844_v42 = vsel %vm843_vm4, %v2143_v32, %v840_v39  ;;  %v847_v43 = vmul.f32 %v2145_v38, %v846_v40 }
 0x12e   : > { %v855_v45 = vmul.f32 %v844_v42, %v821_v19 }
 0x12f   : > { %v848_v46 = vmul.f32 0.5, %v847_v43 }
 0x130   : > { %v860_v47 = vmul.f32 %v2138_v41, %v855_v45 }
 0x131   : > { %v849_v48 = vsub.f32 1.5, %v848_v46 }
 0x132   : > { %v865_v49 = vadd.f32 %v2139_v44, %v860_v47 }
 0x133   : > { %v850_v50 = vmul.f32 %v2145_v38, %v849_v48 }
 0x134   : > { %867 = vst.msk [vmem:[#allocation2] sm:$0xff] %vm805_vm0, %v865_v49 }
 0x135   : > { %v854_v51 = vsel %vm853_vm7, %v2145_v38, %v850_v50 }
 0x136   : > { %v856_v52 = vmul.f32 %v854_v51, %v822_v24 }
 0x138   : > { %v861_v53 = vmul.f32 %v2138_v41, %v856_v52 }
 0x13a   : > { %v866_v54 = vadd.f32 %v2139_v44, %v861_v53 }
 0x13c   : > { %868 = vst.msk [vmem:[#allocation2 + $0x8] sm:$0xff] %vm805_vm0, %v866_v54 }
 0x13d PF: > { %v877_v55 = vld [vmem:[%s2387_s28 + $0x18] sm:$0xff]  ;;  %v876_v56 = vld [vmem:[%s2387_s28 + $0x10] sm:$0xff]  ;;  %v875_v57 = vld [vmem:[%s2387_s28 + $0x8] sm:$0xff]  ;;  %vm882_vm8 = vcmask 261120   ;;  %s2732_s19 = scalar_lea.vmem %s2695_s7, %s2377_s23  ;;  %s2248_s20 = smov 96   ;;  %vm919_vm9 = vcmask 64512  }
 0x13e   : > { %901 = vmatpush.msra.mxu0 %v877_v55  ;;  %v874_v58 = vld [vmem:[%s2387_s28] sm:$0xff]  ;;  %s2247_s28 = smov 88   ;;  %s2249_s3 = smov 120   ;;  %vm1715_vm1 = vcmask 523264  }
 0x13f   : > { %v2462_v59 = vld [vmem:[#allocation2] sm:$0xff]  ;;  %s2250_s26 = smov 64   ;;  %s2251_s24 = smov 80  }
 0x140   : > { %902 = vmatpush.msra.mxu0 %v876_v56  ;;  %v2146_v61 = vld [vmem:[%s2732_s19] ss:$0 sm:$0xff]  ;;  %s2252_s27 = smov 56   ;;  %s2253_s4 = smov 112  }
 0x141   : > { %v2497_v7 = vld [vmem:[%s2693_s5] sm:$0x3]  ;;  %s2733_s29 = sld [smem:[#allocation7_spill]]  ;;  %s2254_s30 = smov 48  }
 0x142   : > { %903 = vmatpush.msra.mxu0 %v875_v57  ;;  %v870_v8 = vsub.f32 1.0, %v2497_v7  ;;  %s2255_s21 = smov 72   ;;  %s2256_s19 = smov 104  }
 0x143   : > { %v2466_v60 = vld [vmem:[#allocation2 + $0x8] sm:$0xff]  ;;  %s2734_s25 = scalar_lea.vmem %s2697_s9, %s2377_s23  ;;  %p2099_p5 = scmp.ne.s32.totalorder %s2371_s22, 1 }
 0x144   : > { %904 = vmatpush.msra.mxu0 %v874_v58  ;;  %v871_v9 = vmul.f32 -1e+09, %v870_v8 }
 0x145   : > { %2061 = vmatmul.msk.f32.vlgmr.msra.gmra.mxu0 %vm882_vm8, %v2462_v59 }
 0x146   : > { %v2500_v10 = vperm.slane %v871_v9, 0  ;;  %v974_v18 = vrot.slane %v871_v9, 1 }
 0x148   : > { %v2506_v20 = vperm.slane %v974_v18, 0 }
 0x14d   : > { %2062 = vmatmul.msk.f32.gmra.mxu0 %vm882_vm8, %v2466_v60 }
 0x1c2   : > { %v906_v62 = vpop.f32.mrf.mxu0 }
 0x1c3   : > { %v2475_v63 = vadd.f32 %v2146_v61, %v906_v62  ;;  %v913_v62 = vld [vmem:[%s2733_s29 + $0x8] sm:$0xff] }
 0x1c5   : > { %1057 = vrot.lane.b32.xlu1 %v2475_v63, %s2247_s28  ;;  %917 = vrot.lane.b32.xlu0 %v2475_v63, %s2248_s20 }
 0x1ca   : > { %v909_v0 = vpop.f32.mrf.mxu0 }
 0x1cb   : > { %v2479_v1 = vadd.f32 %v2146_v61, %v909_v0  ;;  %v912_v61 = vld [vmem:[%s2733_s29] sm:$0xff] }
 0x1cd   : > { %1055 = vrot.lane.b32.xlu1 %v2475_v63, %s2249_s3  ;;  %945 = vrot.lane.b32.xlu0 %v2479_v1, %s2248_s20  ;;  %s2738_s20 = scalar_lea.vmem %s2704_s16, %s2377_s23 }
 0x1d5   : > { %1085 = vrot.lane.b32.xlu1 %v2479_v1, %s2247_s28  ;;  %s2257_s28 = smov 40  }
 0x237   : > { %v1058_v2 = vpop.permute.xlu1 %1057  ;;  %v918_v3 = vpop.permute.xlu0 %917 }
 0x238   : > { %2063 = vmatpush.xpose.msk.msrb.mxu0 %vm919_vm9, %v918_v3  ;;  %2069 = vmatpush.xpose.msk.msra.mxu1 %vm919_vm9, %v1058_v2 }
 0x23b   : > { %2064 = vmatmul.msk.f32.vlgmr.msrb.gmra.mxu0 %vm919_vm9, %v2475_v63 }
 0x23c   : > { %1239 = vmatpush.msra.mxu0 %v912_v61 }
 0x23f   : > { %v1056_v4 = vpop.permute.xlu1 %1055  ;;  %v946_v5 = vpop.permute.xlu0 %945 }
 0x240   : > { %2065 = vmatpush.xpose.msk.msra.mxu2 %vm919_vm9, %v946_v5  ;;  %2070 = vmatmul.msk.f32.vlgmr.msra.gmra.mxu1 %vm919_vm9, %v1056_v4 }
 0x243   : > { %2066 = vmatmul.msk.f32.vlgmr.msra.gmra.mxu2 %vm919_vm9, %v2479_v1 }
 0x247   : > { %v1086_v6 = vpop.permute.xlu1 %1085 }
 0x248   : > { %2071 = vmatpush.xpose.msk.msrb.mxu2 %vm919_vm9, %v1086_v6 }
 0x24c   : > { %1210 = vmatpush.msra.mxu2 %v913_v62 }
 0x2b8   : > { %v941_v11 = vpop.f32.mrf.mxu0 }
 0x2b9   : > { %v971_v12 = vmul.f32 0.35355338, %v941_v11 }
 0x2bb   : > { %v979_v13 = vadd.f32 %v2500_v10, %v971_v12 }
 0x2bd   : > { %v1080_v14 = vpop.f32.mrf.mxu1  ;;  %v981_v15 = vsel %vm919_vm9, %v979_v13, -inf }
 0x2be   : > { %v1111_v16 = vmul.f32 0.35355338, %v1080_v14  ;;  %982 = vmax.xlane.f32.xlu2 %v981_v15 }
 0x2c0   : > { %v1113_v17 = vadd.f32 %v1111_v16, %v2500_v10 }
 0x2c2   : > { %v1115_v19 = vsel %vm919_vm9, %v1113_v17, -inf }
 0x2c3   : > { %1116 = vmax.xlane.f32.xlu0 %v1115_v19 }
 0x2c6   : > { %v968_v21 = vpop.f32.mrf.mxu2 }
 0x2c7   : > { %v972_v22 = vmul.f32 0.35355338, %v968_v21 }
 0x2c9   : > { %v980_v23 = vadd.f32 %v2506_v20, %v972_v22 }
 0x2cb   : > { %v984_v24 = vsel %vm919_vm9, %v980_v23, -inf }
 0x2cc   : > { %985 = vmax.xlane.f32.xlu2 %v984_v24 }
 0x2d7   : > { %1029 = vrot.lane.b32.xlu0 %v2479_v1, %s2250_s26 }
 0x2df   : > { %1083 = vrot.lane.b32.xlu0 %v2479_v1, %s2249_s3 }
 0x2e4   : > { %1003 = vrot.lane.b32.xlu2 %v2475_v63, %s2250_s26  ;;  %s2735_s26 = scalar_lea.vmem %s2698_s10, %s2377_s23 }
 0x2e7   : > { %1249 = vrot.lane.b32.xlu0 %v2475_v63, %s2251_s24 }
 0x2ef   : > { %1277 = vrot.lane.b32.xlu0 %v2479_v1, %s2251_s24 }
 0x331   : > { %v983_v25 = vpop.xlane.xlu2 %982 }
 0x332   : > { %v987_v26 = vsub.f32 %v979_v13, %v983_v25 }
 0x334   : > { %v989_v27 = vmul.f32 1.442695, %v987_v26 }
 0x336   : > { %2154 = vpow2.f32 %v989_v27  ;;  %v1117_v28 = vpop.xlane.xlu0 %1116 }
 0x337   : > { %v1121_v29 = vsub.f32 %v1113_v17, %v1117_v28 }
 0x339   : > { %v1123_v30 = vmul.f32 1.442695, %v1121_v29 }
 0x33b   : > { %2156 = vpow2.f32 %v1123_v30 }
 0x33c   : > { %v2155_v31 = vpop.eup %2154 }
 0x33d   : > { %v993_v32 = vsel %vm919_vm9, %v2155_v31, 0.0 }
 0x33e   : > { %994 = vadd.xlane.f32.xlu1 %v993_v32 }
 0x33f   : > { %v986_v33 = vpop.xlane.xlu2 %985 }
 0x340   : > { %v988_v34 = vsub.f32 %v980_v23, %v986_v33 }
 0x341   : > { %v2157_v35 = vpop.eup %2156 }
 0x342   : > { %v991_v36 = vmul.f32 1.442695, %v988_v34  ;;  %v1127_v37 = vsel %vm919_vm9, %v2157_v35, 0.0 }
 0x343   : > { %1128 = vadd.xlane.f32.xlu2 %v1127_v37 }
 0x344   : > { %2158 = vpow2.f32 %v991_v36 }
 0x347   : > { %v1004_v38 = vpop.permute.xlu2 %1003 }
 0x348   : > { %1024 = vmatpush.msra.mxu3 %v1004_v38 }
 0x349   : > { %v1030_v39 = vpop.permute.xlu0 %1029 }
 0x34a   : > { %v2159_v40 = vpop.eup %2158  ;;  %1050 = vmatpush.msrb.mxu3 %v1030_v39 }
 0x34b   : > { %v996_v41 = vsel %vm919_vm9, %v2159_v40, 0.0 }
 0x34c   : > { %997 = vadd.xlane.f32.xlu2 %v996_v41 }
 0x351   : > { %v1084_v42 = vpop.permute.xlu0 %1083 }
 0x352   : > { %2072 = vmatmul.msk.f32.vlgmr.msrb.gmra.mxu2 %vm919_vm9, %v1084_v42 }
 0x357   : > { %1137 = vrot.lane.b32.xlu1 %v2475_v63, %s2252_s27 }
 0x359   : > { %v1250_v51 = vpop.permute.xlu0 %1249 }
 0x361   : > { %v1278_v16 = vpop.permute.xlu0 %1277 }
 0x364   : > { %1247 = vrot.lane.b32.xlu2 %v2475_v63, %s2253_s4 }
 0x3b1   : > { %v995_v43 = vpop.xlane.xlu1 %994 }
 0x3b2   : > { %2160 = vrcp.f32 %v995_v43 }
 0x3b6   : > { %v1129_v44 = vpop.xlane.xlu2 %1128 }
 0x3b8   : > { %v2161_v45 = vpop.eup %2160 }
 0x3b9   : > { %v1001_v46 = vmul.f32 %v2161_v45, %v2155_v31 }
 0x3bb   : > { %2067 = vmatmul.msk.f32.vlgmr.msra.gmra.mxu3 %vm919_vm9, %v1001_v46 }
 0x3bf   : > { %v998_v47 = vpop.xlane.xlu2 %997 }
 0x3c0   : > { %2162 = vrcp.f32 %v998_v47 }
 0x3c1   : > { %2164 = vrcp.f32 %v1129_v44 }
 0x3c6   : > { %v2163_v48 = vpop.eup %2162 }
 0x3c7   : > { %v1002_v49 = vmul.f32 %v2163_v48, %v2159_v40  ;;  %v2165_v52 = vpop.eup %2164  ;;  %v1248_v56 = vpop.permute.xlu2 %1247  ;;  %v914_v40 = vld [vmem:[%s2733_s29 + $0x10] sm:$0xff] }
 0x3c8   : > { %v1135_v53 = vmul.f32 %v2165_v52, %v2157_v35  ;;  %1402 = vmatpush.msrb.mxu2 %v914_v40 }
 0x3c9   : > { %v1138_v50 = vpop.permute.xlu1 %1137  ;;  %2068 = vmatmul.msk.f32.vlgmr.msrb.gmra.mxu3 %vm919_vm9, %v1002_v49 }
 0x3ca   : > { %1158 = vmatpush.msra.mxu3 %v1138_v50 }
 0x3cc   : > { %2079 = vmatpush.xpose.msk.msrb.mxu3 %vm919_vm9, %v1250_v51 }
 0x3d1   : > { %2073 = vmatmul.msk.f32.vlgmr.msra.gmra.mxu3 %vm919_vm9, %v1135_v53 }
 0x3d5   : > { %v1108_v54 = vpop.f32.mrf.mxu2 }
 0x3d6   : > { %v1112_v55 = vmul.f32 0.35355338, %v1108_v54 }
 0x3d8   : > { %v1114_v57 = vadd.f32 %v1112_v55, %v2506_v20 }
 0x3d9   : > { %2080 = vmatmul.msk.f32.vlgmr.msrb.gmra.mxu3 %vm919_vm9, %v1248_v56 }
 0x3da   : > { %v1118_v58 = vsel %vm919_vm9, %v1114_v57, -inf }
 0x3db   : > { %1119 = vmax.xlane.f32.xlu1 %v1118_v58 }
 0x3f4   : > { %1163 = vrot.lane.b32.xlu1 %v2479_v1, %s2252_s27 }
 0x3fc   : > { %1329 = vrot.lane.b32.xlu1 %v2475_v63, %s2254_s30 }
 0x404   : > { %1442 = vrot.lane.b32.xlu1 %v2479_v1, %s2255_s21 }
 0x40c   : > { %1440 = vrot.lane.b32.xlu1 %v2479_v1, %s2256_s19 }
 0x43e   : > { %v1026_v0 = vpop.f32.mrf.mxu3 }
 0x43f   : > { %2077 = vmatmul.msk.f32.vlgmr.msra.gmra.mxu0 %vm919_vm9, %v1026_v0 }
 0x44c   : > { %v1052_v2 = vpop.f32.mrf.mxu3 }
 0x44d   : > { %2078 = vmatmul.msk.f32.gmra.mxu0 %vm919_vm9, %v1052_v2 }
 0x44e   : > { %v1120_v3 = vpop.xlane.xlu1 %1119 }
 0x44f   : > { %v1122_v4 = vsub.f32 %v1114_v57, %v1120_v3 }
 0x451   : > { %v1125_v5 = vmul.f32 1.442695, %v1122_v4 }
 0x453   : > { %2166 = vpow2.f32 %v1125_v5 }
 0x454   : > { %v1160_v6 = vpop.f32.mrf.mxu3 }
 0x455   : > { %2075 = vmatmul.msk.f32.vlgmr.msra.gmra.mxu2 %vm919_vm9, %v1160_v6 }
 0x459   : > { %v2167_v8 = vpop.eup %2166 }
 0x45a   : > { %v1130_v9 = vsel %vm919_vm9, %v2167_v8, 0.0 }
 0x45b   : > { %1131 = vadd.xlane.f32.xlu2 %v1130_v9 }
 0x45c   : > { %v1272_v11 = vpop.f32.mrf.mxu3 }
 0x45d   : > { %v1303_v12 = vmul.f32 0.35355338, %v1272_v11 }
 0x45f   : > { %v1305_v13 = vadd.f32 %v1303_v12, %v2500_v10 }
 0x461   : > { %v1307_v14 = vsel %vm919_vm9, %v1305_v13, -inf }
 0x462   : > { %1308 = vmax.xlane.f32.xlu0 %v1307_v14 }
 0x466   : > { %v1164_v15 = vpop.permute.xlu1 %1163 }
 0x467   : > { %1184 = vmatpush.msrb.mxu1 %v1164_v15 }
 0x469   : > { %2081 = vmatpush.xpose.msk.msra.mxu1 %vm919_vm9, %v1278_v16 }
 0x46e   : > { %v1330_v17 = vpop.permute.xlu1 %1329 }
 0x46f   : > { %1350 = vmatpush.msra.mxu3 %v1330_v17 }
 0x473   : > { %1275 = vrot.lane.b32.xlu2 %v2479_v1, %s2253_s4  ;;  %s2736_s4 = scalar_lea.vmem %s2699_s11, %s2377_s23 }
 0x476   : > { %v1443_v18 = vpop.permute.xlu1 %1442  ;;  %1414 = vrot.lane.b32.xlu0 %v2475_v63, %s2255_s21  ;;  %s2737_s21 = scalar_lea.vmem %s2701_s13, %s2377_s23 }
 0x477   : > { %2089 = vmatpush.xpose.msk.msrb.mxu3 %vm919_vm9, %v1443_v18 }
 0x47e   : > { %v1441_v38 = vpop.permute.xlu1 %1440 }
 0x4bc   : > { %v2564_v41 = vpop.f32.mrf.mxu0 }
 0x4ca   : > { %v2566_v45 = vpop.f32.mrf.mxu0 }
 0x4ce   : > { %v1132_v19 = vpop.xlane.xlu2 %1131 }
 0x4cf   : > { %2168 = vrcp.f32 %v1132_v19 }
 0x4d5   : > { %v2169_v21 = vpop.eup %2168  ;;  %v1309_v22 = vpop.xlane.xlu0 %1308 }
 0x4d6   : > { %v1313_v23 = vsub.f32 %v1305_v13, %v1309_v22  ;;  %v1136_v24 = vmul.f32 %v2169_v21, %v2167_v8  ;;  %v1276_v26 = vpop.permute.xlu2 %1275 }
 0x4d8   : > { %v1315_v25 = vmul.f32 1.442695, %v1313_v23  ;;  %2074 = vmatmul.msk.f32.vlgmr.msrb.gmra.mxu1 %vm919_vm9, %v1136_v24  ;;  %v1212_v22 = vpop.f32.mrf.mxu2 }
 0x4da   : > { %2170 = vpow2.f32 %v1315_v25  ;;  %v1242_v25 = vadd.f32 %v2564_v41, %v1212_v22  ;;  %v2258_v41 = vmov 32.0  }
 0x4e0   : > { %v2171_v27 = vpop.eup %2170  ;;  %2082 = vmatmul.msk.f32.vlgmr.msra.gmra.mxu1 %vm919_vm9, %v1276_v26 }
 0x4e1   : > { %v1319_v28 = vsel %vm919_vm9, %v2171_v27, 0.0 }
 0x4e2   : > { %1320 = vadd.xlane.f32.xlu0 %v1319_v28 }
 0x4e8   : > { %v1415_v29 = vpop.permute.xlu0 %1414 }
 0x4e9   : > { %2087 = vmatpush.xpose.msk.msrb.mxu0 %vm919_vm9, %v1415_v29 }
 0x4f6   : > { %1412 = vrot.lane.b32.xlu0 %v2475_v63, %s2256_s19 }
 0x555   : > { %v1321_v30 = vpop.xlane.xlu0 %1320  ;;  %v1186_v31 = vpop.f32.mrf.mxu1 }
 0x556   : > { %2172 = vrcp.f32 %v1321_v30  ;;  %2076 = vmatmul.msk.f32.gmra.mxu2 %vm919_vm9, %v1186_v31 }
 0x55c   : > { %v2173_v32 = vpop.eup %2172 }
 0x55d   : > { %v1327_v33 = vmul.f32 %v2173_v32, %v2171_v27  ;;  %v1300_v34 = vpop.f32.mrf.mxu1  ;;  %v2147_v27 = vld [vmem:[%s2734_s25] ss:$0 sm:$0xff] }
 0x55e   : > { %v1304_v35 = vmul.f32 0.35355338, %v1300_v34 }
 0x55f   : > { %2083 = vmatmul.msk.f32.vlgmr.msra.gmra.mxu3 %vm919_vm9, %v1327_v33 }
 0x560   : > { %v1306_v36 = vadd.f32 %v1304_v35, %v2506_v20 }
 0x562   : > { %v1310_v37 = vsel %vm919_vm9, %v1306_v36, -inf }
 0x563   : > { %1311 = vmax.xlane.f32.xlu2 %v1310_v37 }
 0x567   : > { %2090 = vmatmul.msk.f32.vlgmr.msrb.gmra.mxu3 %vm919_vm9, %v1441_v38 }
 0x568   : > { %v1413_v39 = vpop.permute.xlu0 %1412 }
 0x569   : > { %2088 = vmatmul.msk.f32.vlgmr.msrb.gmra.mxu0 %vm919_vm9, %v1413_v39 }
 0x5d6   : > { %v1312_v42 = vpop.xlane.xlu2 %1311 }
 0x5d7   : > { %v1314_v43 = vsub.f32 %v1306_v36, %v1312_v42 }
 0x5d9   : > { %v1317_v44 = vmul.f32 1.442695, %v1314_v43  ;;  %v1215_v23 = vpop.f32.mrf.mxu2 }
 0x5da   : > { %v1245_v32 = vadd.f32 %v2566_v45, %v1215_v23 }
 0x5db   : > { %2174 = vpow2.f32 %v1317_v44 }
 0x5e1   : > { %v2175_v46 = vpop.eup %2174 }
 0x5e2   : > { %v1352_v47 = vpop.f32.mrf.mxu3  ;;  %v1322_v48 = vsel %vm919_vm9, %v2175_v46, 0.0 }
 0x5e3   : > { %2085 = vmatmul.msk.f32.vlgmr.msrb.gmra.mxu2 %vm919_vm9, %v1352_v47  ;;  %1323 = vadd.xlane.f32.xlu2 %v1322_v48 }
 0x5e6   : > { %v1437_v49 = vpop.f32.mrf.mxu0 }
 0x5e7   : > { %v1468_v50 = vmul.f32 0.35355338, %v1437_v49 }
 0x5e9   : > { %v1470_v51 = vadd.f32 %v1468_v50, %v2500_v10 }
 0x5ea   : > { %v1465_v52 = vpop.f32.mrf.mxu3 }
 0x5eb   : > { %v1469_v53 = vmul.f32 0.35355338, %v1465_v52  ;;  %v1472_v54 = vsel %vm919_vm9, %v1470_v51, -inf }
 0x5ec   : > { %1473 = vmax.xlane.f32.xlu0 %v1472_v54 }
 0x5ed   : > { %v1471_v55 = vadd.f32 %v1469_v53, %v2506_v20 }
 0x5ef   : > { %v1475_v56 = vsel %vm919_vm9, %v1471_v55, -inf }
 0x5f0   : > { %1476 = vmax.xlane.f32.xlu1 %v1475_v56  ;;  %v1651_v56 = vld [vmem:[%s2409_s6 + $0x18] sm:$0xff] }
 0x609   : > { %1355 = vrot.lane.b32.xlu1 %v2479_v1, %s2254_s30 }
 0x656   : > { %v1324_v20 = vpop.xlane.xlu2 %1323 }
 0x65f   : > { %v1474_v57 = vpop.xlane.xlu0 %1473 }
 0x660   : > { %v1478_v58 = vsub.f32 %v1470_v51, %v1474_v57  ;;  %v1650_v57 = vld [vmem:[%s2409_s6 + $0x10] sm:$0xff] }
 0x662   : > { %v1480_v61 = vmul.f32 1.442695, %v1478_v58  ;;  %v1649_v58 = vld [vmem:[%s2409_s6 + $0x8] sm:$0xff] }
 0x663   : > { %v1477_v62 = vpop.xlane.xlu1 %1476 }
 0x664   : > { %2176 = vpow2.f32 %v1480_v61  ;;  %v1479_v0 = vsub.f32 %v1471_v55, %v1477_v62  ;;  %v1648_v61 = vld [vmem:[%s2409_s6] sm:$0xff]  ;;  %s2739_s6 = sld [smem:[#allocation15_spill]] (!%p2099_p5) }
 0x666   : > { %v1482_v10 = vmul.f32 1.442695, %v1479_v0  ;;  %v1404_v24 = vpop.f32.mrf.mxu2 }
 0x667   : > { %v1410_v26 = vadd.f32 %v1404_v24, %v1242_v25 }
 0x668   : > { %2178 = vpow2.f32 %v1482_v10 }
 0x669   : > { %2180 = vrcp.f32 %v1324_v20 }
 0x66a   : > { %v2177_v2 = vpop.eup %2176 }
 0x66b   : > { %v1484_v3 = vsel %vm919_vm9, %v2177_v2, 0.0 }
 0x66c   : > { %1485 = vadd.xlane.f32.xlu0 %v1484_v3 }
 0x66e   : > { %v2179_v4 = vpop.eup %2178 }
 0x66f   : > { %v1487_v5 = vsel %vm919_vm9, %v2179_v4, 0.0  ;;  %v2181_v6 = vpop.eup %2180 }
 0x670   : > { %1488 = vadd.xlane.f32.xlu2 %v1487_v5  ;;  %v1328_v8 = vmul.f32 %v2181_v6, %v2175_v46 }
 0x67b   : > { %v1356_v9 = vpop.permute.xlu1 %1355 }
 0x67c   : > { %1376 = vmatpush.msrb.mxu1 %v1356_v9 }
 0x67d   : > { %2084 = vmatmul.msk.f32.vlgmr.msrb.gmra.mxu1 %vm919_vm9, %v1328_v8 }
 0x680   : > { %1494 = vrot.lane.b32.xlu0 %v2475_v63, %s2257_s28 }
 0x688   : > { %1520 = vrot.lane.b32.xlu2 %v2479_v1, %s2257_s28  ;;  %v915_v1 = vld [vmem:[%s2733_s29 + $0x18] sm:$0xff] }
 0x689   : > { %1567 = vmatpush.msra.mxu3 %v915_v1 }
 0x6df   : > { %v1486_v12 = vpop.xlane.xlu0 %1485 }
 0x6e3   : > { %v1489_v11 = vpop.xlane.xlu2 %1488 }
 0x6e4   : > { %2182 = vrcp.f32 %v1489_v11 }
 0x6e5   : > { %2184 = vrcp.f32 %v1486_v12 }
 0x6e6   : > { %2186 = vrcp.f32 %v2258_v41 }
 0x6ea   : > { %v2183_v13 = vpop.eup %2182 }
 0x6eb   : > { %v1493_v14 = vmul.f32 %v2183_v13, %v2179_v4  ;;  %v1521_v15 = vpop.permute.xlu2 %1520  ;;  %v2185_v16 = vpop.eup %2184 }
 0x6ec   : > { %1541 = vmatpush.msra.mxu0 %v1521_v15  ;;  %v1492_v17 = vmul.f32 %v2185_v16, %v2177_v2  ;;  %v2187_v42 = vpop.eup %2186 }
 0x6ed   : > { %2092 = vmatmul.msk.f32.vlgmr.msra.gmra.mxu0 %vm919_vm9, %v1493_v14  ;;  %v1594_v43 = vmul.f32 32.0, %v2187_v42  ;;  %vm1598_vm10 = vweird.f32 %v2187_v42  ;;  %v2148_v14 = vld [vmem:[%s2735_s26] ss:$0 sm:$0xff] }
 0x6ef   : > { %v1595_v44 = vsub.f32 1.0, %v1594_v43 }
 0x6f1   : > { %v1596_v45 = vmul.f32 %v2187_v42, %v1595_v44 }
 0x6f2   : > { %v1495_v18 = vpop.permute.xlu0 %1494 }
 0x6f3   : > { %1515 = vmatpush.msra.mxu1 %v1495_v18  ;;  %v2149_v18 = vld [vmem:[%s2736_s4] ss:$0 sm:$0xff] }
 0x6f4   : > { %2091 = vmatmul.msk.f32.vlgmr.msra.gmra.mxu1 %vm919_vm9, %v1492_v17 }
 0x6f5   : > { %1674 = vmatpush.msrb.mxu1 %v1651_v56 }
 0x6f7   : > { %1675 = vmatpush.msrb.mxu1 %v1650_v57  ;;  %v2151_v57 = vld [vmem:[%s781_s2] ss:$0 sm:$0xff] }
 0x6f9   : > { %1676 = vmatpush.msrb.mxu1 %v1649_v58 }
 0x6fa   : > { %v1378_v63 = vpop.f32.mrf.mxu1 }
 0x6fb   : > { %2086 = vmatmul.msk.f32.gmra.mxu2 %vm919_vm9, %v1378_v63  ;;  %1677 = vmatpush.msrb.mxu1 %v1648_v61 }
 0x76a   : > { %v1543_v21 = vpop.f32.mrf.mxu0 }
 0x771   : > { %v1517_v19 = vpop.f32.mrf.mxu1 }
 0x772   : > { %2093 = vmatmul.msk.f32.vlgmr.msra.gmra.mxu3 %vm919_vm9, %v1517_v19 }
 0x77a   : > { %2094 = vmatmul.msk.f32.gmra.mxu3 %vm919_vm9, %v1543_v21 }
 0x77e   : > { %v1407_v31 = vpop.f32.mrf.mxu2 }
 0x77f   : > { %v1411_v34 = vadd.f32 %v1407_v31, %v1245_v32  ;;  %v1706_v31 = vld [vmem:[%s2419_s1 + $0x18] sm:$0xff]  ;;  %v1705_v32 = vld [vmem:[%s2419_s1 + $0x10] sm:$0xff] }
 0x7f5   : > { %v1569_v28 = vpop.f32.mrf.mxu3 }
 0x7f6   : > { %v1575_v29 = vadd.f32 %v1569_v28, %v1410_v26  ;;  %v1709_v28 = vld [vmem:[%s2419_s1 + $0x30] sm:$0xff] }
 0x7f8   : > { %v1581_v30 = vadd.f32 %v2147_v27, %v1575_v29  ;;  %v1708_v29 = vld [vmem:[%s2419_s1 + $0x28] sm:$0xff] }
 0x7fa   : > { %v1583_v33 = vadd.f32 %v1581_v30, %v2462_v59  ;;  %v1597_v59 = vadd.f32 %v2187_v42, %v1596_v45  ;;  %v1707_v30 = vld [vmem:[%s2419_s1 + $0x20] sm:$0xff] }
 0x7fc   : > { %v1587_v35 = vsel %vm882_vm8, %v1583_v33, 0.0  ;;  %v2598_v46 = vsel %vm1598_vm10, %v2187_v42, %v1597_v59 }
 0x7fd   : > { %1588 = vadd.xlane.f32.xlu1 %v1587_v35  ;;  %v1572_v36 = vpop.f32.mrf.mxu3  ;;  %v2150_v35 = vld [vmem:[%s2737_s21] ss:$0 sm:$0xff] }
 0x7fe   : > { %v1576_v37 = vadd.f32 %v1572_v36, %v1411_v34  ;;  %v1703_v34 = vld [vmem:[%s2419_s1] sm:$0xff] }
 0x800   : > { %v1582_v38 = vadd.f32 %v2147_v27, %v1576_v37  ;;  %v1710_v27 = vld [vmem:[%s2419_s1 + $0x38] sm:$0xff] }
 0x801   : > { %1730 = vmatpush.msra.mxu2 %v1710_v27 }
 0x802   : > { %v1584_v39 = vadd.f32 %v1582_v38, %v2466_v60 }
 0x803   : > { %1731 = vmatpush.msra.mxu2 %v1709_v28 }
 0x804   : > { %v1590_v40 = vsel %vm882_vm8, %v1584_v39, 0.0 }
 0x805   : > { %1591 = vadd.xlane.f32.xlu0 %v1590_v40  ;;  %1732 = vmatpush.msra.mxu2 %v1708_v29  ;;  %v2152_v29 = vld [vmem:[%s2738_s20] ss:$0 sm:$0xff] }
 0x807   : > { %1733 = vmatpush.msra.mxu2 %v1707_v30 }
 0x809   : > { %1734 = vmatpush.msra.mxu2 %v1706_v31  ;;  %v2153_v31 = vld [vmem:[%s787_s18] ss:$0 sm:$0xff] }
 0x80b   : > { %1735 = vmatpush.msra.mxu2 %v1705_v32 }
 0x870   : > { %v1589_v47 = vpop.xlane.xlu1 %1588 }
 0x871   : > { %v1600_v48 = vmul.f32 %v2598_v46, %v1589_v47 }
 0x873   : > { %v1602_v60 = vsub.f32 %v1583_v33, %v1600_v48  ;;  %v1704_v33 = vld [vmem:[%s2419_s1 + $0x8] sm:$0xff]  ;;  %s2740_s1 = sld [smem:[#allocation16_spill]] (!%p2099_p5) }
 0x874   : > { %1736 = vmatpush.msra.mxu2 %v1704_v33 }
 0x875   : > { %v1604_v49 = vmul.f32 %v1602_v60, %v1602_v60 }
 0x876   : > { %1737 = vmatpush.msra.mxu2 %v1703_v34 }
 0x877   : > { %v1606_v50 = vsel %vm882_vm8, %v1604_v49, 0.0 }
 0x878   : > { %1607 = vadd.xlane.f32.xlu2 %v1606_v50  ;;  %v1592_v51 = vpop.xlane.xlu0 %1591 }
 0x879   : > { %v1601_v52 = vmul.f32 %v2598_v46, %v1592_v51 }
 0x87b   : > { %v1603_v53 = vsub.f32 %v1584_v39, %v1601_v52 }
 0x87d   : > { %v1605_v54 = vmul.f32 %v1603_v53, %v1603_v53 }
 0x87f   : > { %v1609_v55 = vsel %vm882_vm8, %v1605_v54, 0.0 }
 0x880   : > { %1610 = vadd.xlane.f32.xlu1 %v1609_v55 }
 0x8eb   : > { %v1608_v62 = vpop.xlane.xlu2 %1607 }
 0x8ec   : > { %v1612_v0 = vmul.f32 %v1608_v62, %v2598_v46 }
 0x8ee   : > { %v1614_v10 = vadd.f32 1e-12, %v1612_v0 }
 0x8f0   : > { %2188 = vrsqrt.f32 %v1614_v10  ;;  %vm1622_vm12 = vweird.f32 %v1614_v10 }
 0x8f3   : > { %v1611_v2 = vpop.xlane.xlu1 %1610 }
 0x8f4   : > { %v1613_v3 = vmul.f32 %v1611_v2, %v2598_v46 }
 0x8f6   : > { %v2189_v4 = vpop.eup %2188  ;;  %v1615_v20 = vadd.f32 1e-12, %v1613_v3 }
 0x8f7   : > { %v1617_v5 = vmul.f32 %v2189_v4, %v1614_v10  ;;  %vm1623_vm11 = vweird.f32 %v2189_v4 }
 0x8f8   : > { %2190 = vrsqrt.f32 %v1615_v20  ;;  %vm1624_vm13 = vmor %vm1622_vm12, %vm1623_vm11  ;;  %vm1632_vm15 = vweird.f32 %v1615_v20 }
 0x8f9   : > { %v1618_v6 = vmul.f32 %v2189_v4, %v1617_v5 }
 0x8fb   : > { %v1619_v8 = vmul.f32 0.5, %v1618_v6 }
 0x8fd   : > { %v1620_v9 = vsub.f32 1.5, %v1619_v8 }
 0x8fe   : > { %v2191_v11 = vpop.eup %2190 }
 0x8ff   : > { %v1621_v12 = vmul.f32 %v2189_v4, %v1620_v9  ;;  %v1627_v13 = vmul.f32 %v2191_v11, %v1615_v20  ;;  %vm1633_vm14 = vweird.f32 %v2191_v11 }
 0x900   : > { %vm1634_vm0 = vmor %vm1632_vm15, %vm1633_vm14 }
 0x901   : > { %v1625_v15 = vsel %vm1624_vm13, %v2189_v4, %v1621_v12  ;;  %v1628_v16 = vmul.f32 %v2191_v11, %v1627_v13 }
 0x902   : > { %v1636_v17 = vmul.f32 %v1625_v15, %v1602_v60 }
 0x903   : > { %v1629_v63 = vmul.f32 0.5, %v1628_v16 }
 0x904   : > { %v1641_v1 = vmul.f32 %v2148_v14, %v1636_v17 }
 0x905   : > { %v1630_v19 = vsub.f32 1.5, %v1629_v63 }
 0x906   : > { %v1646_v21 = vadd.f32 %v2149_v18, %v1641_v1 }
 0x907   : > { %v1631_v22 = vmul.f32 %v2191_v11, %v1630_v19 }
 0x908   : > { %2095 = vmatmul.msk.f32.vlgmr.msrb.gmra.mxu1 %vm882_vm8, %v1646_v21 }
 0x909   : > { %v1635_v23 = vsel %vm1634_vm0, %v2191_v11, %v1631_v22 }
 0x90a   : > { %v1637_v24 = vmul.f32 %v1635_v23, %v1603_v53 }
 0x90c   : > { %v1642_v25 = vmul.f32 %v2148_v14, %v1637_v24 }
 0x90e   : > { %v1647_v26 = vadd.f32 %v2149_v18, %v1642_v25 }
 0x910   : > { %2096 = vmatmul.msk.f32.gmra.mxu1 %vm882_vm8, %v1647_v26 }
 0x985   : > { %v1679_v36 = vpop.f32.mrf.mxu1 }
 0x986   : > { %v1680_v37 = vadd.f32 %v2150_v35, %v1679_v36 }
 0x988   : > { %v1685_v38 = vmul.f32 %v1680_v37, %v1680_v37 }
 0x98a   : > { %v1687_v39 = vmul.f32 %v1685_v38, %v1680_v37 }
 0x98c   : > { %v1689_v40 = vmul.f32 0.044715, %v1687_v39 }
 0x98d   : > { %v1682_v41 = vpop.f32.mrf.mxu1 }
 0x98e   : > { %v1691_v42 = vadd.f32 %v1689_v40, %v1680_v37  ;;  %v1683_v43 = vadd.f32 %v2150_v35, %v1682_v41 }
 0x990   : > { %v1693_v44 = vmul.f32 0.7978846, %v1691_v42  ;;  %v1686_v45 = vmul.f32 %v1683_v43, %v1683_v43 }
 0x992   : > { %2192 = vtanh.f32 %v1693_v44  ;;  %v1688_v59 = vmul.f32 %v1686_v45, %v1683_v43 }
 0x994   : > { %v1690_v47 = vmul.f32 0.044715, %v1688_v59 }
 0x996   : > { %v1692_v48 = vadd.f32 %v1690_v47, %v1683_v43 }
 0x998   : > { %v2193_v60 = vpop.eup %2192  ;;  %v1694_v49 = vmul.f32 0.7978846, %v1692_v48 }
 0x999   : > { %v1697_v50 = vadd.f32 1.0, %v2193_v60 }
 0x99a   : > { %2194 = vtanh.f32 %v1694_v49 }
 0x99b   : > { %v1699_v51 = vmul.f32 0.5, %v1697_v50 }
 0x99d   : > { %v1701_v52 = vmul.f32 %v1699_v51, %v1680_v37 }
 0x99f   : > { %2097 = vmatmul.msk.f32.vlgmr.msra.gmra.mxu2 %vm1715_vm1, %v1701_v52 }
 0x9a0   : > { %v2195_v53 = vpop.eup %2194 }
 0x9a1   : > { %v1698_v54 = vadd.f32 1.0, %v2195_v53 }
 0x9a3   : > { %v1700_v55 = vmul.f32 0.5, %v1698_v54 }
 0x9a5   : > { %v1702_v56 = vmul.f32 %v1700_v55, %v1683_v43 }
 0x9a7   : > { %2098 = vmatmul.msk.f32.gmra.mxu2 %vm1715_vm1, %v1702_v56 }
 0xa22   : > { %v1739_v58 = vpop.f32.mrf.mxu2 }
 0xa23   : > { %v1740_v61 = vadd.f32 %v2151_v57, %v1739_v58 }
 0xa25   : > { %v1745_v62 = vadd.f32 %v1740_v61, %v1646_v21 }
 0xa27   : > { %v1749_v0 = vsel %vm882_vm8, %v1745_v62, 0.0 }
 0xa28   : > { %1750 = vadd.xlane.f32.xlu0 %v1749_v0 }
 0xa2a   : > { %v1742_v10 = vpop.f32.mrf.mxu2 }
 0xa2b   : > { %v1743_v2 = vadd.f32 %v2151_v57, %v1742_v10 }
 0xa2d   : > { %v1746_v3 = vadd.f32 %v1743_v2, %v1647_v26 }
 0xa2f   : > { %v1752_v4 = vsel %vm882_vm8, %v1746_v3, 0.0 }
 0xa30   : > { %1753 = vadd.xlane.f32.xlu1 %v1752_v4 }
 0xa9b   : > { %v1751_v20 = vpop.xlane.xlu0 %1750 }
 0xa9c   : > { %v1755_v5 = vmul.f32 %v1751_v20, %v2598_v46 }
 0xa9e   : > { %v1757_v6 = vsub.f32 %v1745_v62, %v1755_v5 }
 0xaa0   : > { %v1759_v8 = vmul.f32 %v1757_v6, %v1757_v6 }
 0xaa2   : > { %v1761_v9 = vsel %vm882_vm8, %v1759_v8, 0.0 }
 0xaa3   : > { %v1754_v11 = vpop.xlane.xlu1 %1753  ;;  %1762 = vadd.xlane.f32.xlu0 %v1761_v9 }
 0xaa4   : > { %v1756_v12 = vmul.f32 %v1754_v11, %v2598_v46 }
 0xaa6   : > { %v1758_v13 = vsub.f32 %v1746_v3, %v1756_v12 }
 0xaa8   : > { %v1760_v14 = vmul.f32 %v1758_v13, %v1758_v13 }
 0xaaa   : > { %v1764_v15 = vsel %vm882_vm8, %v1760_v14, 0.0 }
 0xaab   : > { %1765 = vadd.xlane.f32.xlu2 %v1764_v15 }
 0xb16   : > { %v1763_v16 = vpop.xlane.xlu0 %1762 }
 0xb17   : > { %v1767_v17 = vmul.f32 %v1763_v16, %v2598_v46 }
 0xb19   : > { %v1769_v18 = vadd.f32 1e-12, %v1767_v17 }
 0xb1b   : > { %2196 = vrsqrt.f32 %v1769_v18  ;;  %vm1777_vm3 = vweird.f32 %v1769_v18 }
 0xb1e   : > { %v1766_v63 = vpop.xlane.xlu2 %1765 }
 0xb1f   : > { %v1768_v1 = vmul.f32 %v1766_v63, %v2598_v46 }
 0xb21   : > { %v2197_v19 = vpop.eup %2196  ;;  %v1770_v21 = vadd.f32 1e-12, %v1768_v1 }
 0xb22   : > { %v1772_v22 = vmul.f32 %v2197_v19, %v1769_v18  ;;  %vm1778_vm2 = vweird.f32 %v2197_v19 }
 0xb23   : > { %2198 = vrsqrt.f32 %v1770_v21  ;;  %vm1779_vm4 = vmor %vm1777_vm3, %vm1778_vm2  ;;  %vm1787_vm6 = vweird.f32 %v1770_v21 }
 0xb24   : > { %v1773_v23 = vmul.f32 %v2197_v19, %v1772_v22 }
 0xb26   : > { %v1774_v24 = vmul.f32 0.5, %v1773_v23 }
 0xb28   : > { %v1775_v25 = vsub.f32 1.5, %v1774_v24 }
 0xb29   : > { %v2199_v26 = vpop.eup %2198 }
 0xb2a   : > { %v1776_v27 = vmul.f32 %v2197_v19, %v1775_v25  ;;  %v1782_v28 = vmul.f32 %v2199_v26, %v1770_v21  ;;  %vm1788_vm5 = vweird.f32 %v2199_v26 }
 0xb2b   : > { %vm1789_vm7 = vmor %vm1787_vm6, %vm1788_vm5 }
 0xb2c   : > { %v1780_v46 = vsel %vm1779_vm4, %v2197_v19, %v1776_v27  ;;  %v1783_v30 = vmul.f32 %v2199_v26, %v1782_v28 }
 0xb2d   : > { %v1791_v32 = vmul.f32 %v1780_v46, %v1757_v6 }
 0xb2e   : > { %v1784_v33 = vmul.f32 0.5, %v1783_v30 }
 0xb2f   : > { %v1796_v34 = vmul.f32 %v2152_v29, %v1791_v32 }
 0xb30   : > { %v1785_v35 = vsub.f32 1.5, %v1784_v33 }
 0xb31   : > { %v1801_v36 = vadd.f32 %v2153_v31, %v1796_v34 }
 0xb32   : > { %v1786_v37 = vmul.f32 %v2199_v26, %v1785_v35 }
 0xb33   : > { %1803 = vst.msk [vmem:[#allocation2] sm:$0xff] %vm882_vm8, %v1801_v36 }
 0xb34   : > { %v1790_v38 = vsel %vm1789_vm7, %v2199_v26, %v1786_v37 }
 0xb35   : > { %v1792_v39 = vmul.f32 %v1790_v38, %v1758_v13 }
 0xb37   : > { %v1797_v40 = vmul.f32 %v2152_v29, %v1792_v39  ;;  %1808 = sbr.rel (%p2099_p5) target bundleno = 3164 (0xc5c), region = 108 }
 0xb39   : > { %v1802_v41 = vadd.f32 %v2153_v31, %v1797_v40 }
 0xb3b   : > { %1804 = vst.msk [vmem:[#allocation2 + $0x8] sm:$0xff] %vm882_vm8, %v1802_v41 }
 0xb3c   : > { %v1810_v42 = vlaneseq  ;;  %v1809_v44 = vperm.slane %v2497_v7, 0  ;;  %v1816_v45 = vperm.slane %v2497_v7, 1  ;;  %v1860_v59 = vld [vmem:[%s2739_s6 + $0x18] sm:$0xff]  ;;  %v1859_v47 = vld [vmem:[%s2739_s6 + $0x10] sm:$0xff]  ;;  %v1858_v48 = vld [vmem:[%s2739_s6 + $0x8] sm:$0xff]  ;;  %vm1867_vm9 = vcmask 1041409  }
 0xb3d   : > { %1883 = vmatpush.msra.mxu0 %v1860_v59  ;;  %v1857_v60 = vld [vmem:[%s2739_s6] sm:$0xff] }
 0xb3e   : > { %v1811_v43 = vshrl.u32 %v1810_v42, 7  ;;  %v2201_v24 = vld [vmem:[%s2740_s1] ss:$0 sm:$0xff] }
 0xb3f   : > { %1884 = vmatpush.msra.mxu0 %v1859_v47 }
 0xb40   : > { %2200 = vset.pattern.permute.xlu0 %v1811_v43 }
 0xb41   : > { %1885 = vmatpush.msra.mxu0 %v1858_v48 }
 0xb43   : > { %1886 = vmatpush.msra.mxu0 %v1857_v60 }
 0xb48   : > { %1814 = vperm.xlu0 %2200, %v1809_v44  }
 0xb50   : > { %1821 = vperm.xlu0 %2200, %v1816_v45  }
 0xbba   : > { %v1815_v7 = vpop.permute.xlu0 %1814 }
 0xbbb   : > { %v1823_v49 = vmul.f32 %v1815_v7, %v1801_v36  ;;  %v1839_v50 = vrot.slane %v1815_v7, 4 }
 0xbbd   : > { %v1840_v51 = vadd.f32 %v1839_v50, %v1815_v7  ;;  %v1825_v52 = vsel %vm882_vm8, %v1823_v49, 0.0 }
 0xbbe   : > { %v1826_v55 = vrot.slane %v1825_v52, 4 }
 0xbbf   : > { %v1841_v53 = vrot.slane %v1840_v51, 2 }
 0xbc0   : > { %v1827_v10 = vadd.f32 %v1826_v55, %v1825_v52 }
 0xbc1   : > { %v1842_v54 = vadd.f32 %v1841_v53, %v1840_v51 }
 0xbc2   : > { %v1822_v56 = vpop.permute.xlu0 %1821  ;;  %v1828_v6 = vrot.slane %v1827_v10, 2 }
 0xbc3   : > { %v1843_v57 = vrot.slane %v1842_v54, 1  ;;  %v1824_v58 = vmul.f32 %v1822_v56, %v1802_v41  ;;  %v1845_v61 = vrot.slane %v1822_v56, 4 }
 0xbc4   : > { %v1829_v13 = vadd.f32 %v1828_v6, %v1827_v10 }
 0xbc5   : > { %v1832_v62 = vsel %vm882_vm8, %v1824_v58, 0.0  ;;  %v1846_v0 = vadd.f32 %v1845_v61, %v1822_v56  ;;  %v1844_v3 = vadd.f32 %v1843_v57, %v1842_v54 }
 0xbc6   : > { %v1833_v2 = vrot.slane %v1832_v62, 4  ;;  %v1830_v17 = vrot.slane %v1829_v13, 1 }
 0xbc7   : > { %v1847_v4 = vrot.slane %v1846_v0, 2  ;;  %v1851_v9 = vmax.f32 %v1844_v3, 1e-09 }
 0xbc8   : > { %v1834_v20 = vadd.f32 %v1833_v2, %v1832_v62  ;;  %v1831_v63 = vadd.f32 %v1830_v17, %v1829_v13 }
 0xbc9   : > { %v1848_v5 = vadd.f32 %v1847_v4, %v1846_v0  ;;  %2202 = vrcp.f32 %v1851_v9 }
 0xbca   : > { %v1835_v8 = vrot.slane %v1834_v20, 2 }
 0xbcb   : > { %v1849_v11 = vrot.slane %v1848_v5, 1 }
 0xbcc   : > { %v1836_v14 = vadd.f32 %v1835_v8, %v1834_v20 }
 0xbcd   : > { %v1850_v12 = vadd.f32 %v1849_v11, %v1848_v5 }
 0xbce   : > { %v1837_v16 = vrot.slane %v1836_v14, 1 }
 0xbcf   : > { %v1852_v15 = vmax.f32 %v1850_v12, 1e-09  ;;  %v2203_v18 = vpop.eup %2202 }
 0xbd0   : > { %v1838_v1 = vadd.f32 %v1837_v16, %v1836_v14  ;;  %v1855_v21 = vmul.f32 %v2203_v18, %v1831_v63 }
 0xbd1   : > { %2204 = vrcp.f32 %v1852_v15 }
 0xbd7   : > { %v2205_v19 = vpop.eup %2204 }
 0xbd8   : > { %v1856_v22 = vmul.f32 %v2205_v19, %v1838_v1 }
 0xbda   : > { %v1868_v23 = vsel %vm1867_vm9, %v1856_v22, %v1855_v21 }
 0xbdb   : > { %2100 = vmatmul.msk.f32.vlgmr.msra.gmra.mxu0 %vm882_vm8, %v1868_v23 }
 0xc58   : > { %v1888_v25 = vpop.f32.mrf.mxu0 }
 0xc59   : > { %v1889_v26 = vadd.f32 %v2201_v24, %v1888_v25 }
 0xc5b   : > { %1891 = vst [vmem:[#allocation3] sm:$0x3] %v1889_v26 }
 0xc5c PF: > { %p2113_p6 = scmp.eq.s32.totalorder %s2371_s22, 1  ;;  %s2259_s19 = smov [#allocation3]  }
 0xc5d   : > { %s1898_s2 = sshll.u32 %s2259_s19, 4  ;;  %s2741_s3 = sld [smem:[#allocation17_spill]]  ;;  %s1899_s2 = int_to_ptr.vmem [resolvable:$true] %s1898_s2 }
 0xc63   : > { %s1900_s25 = sshll.u32 %s2741_s3, 4  ;;  %s1901_s25 = int_to_ptr.hbm [resolvable:$true] %s1900_s25 }
 0xc64   : > { %2110 = dma.vmem_to_hbm [thread:$0]  (%p2113_p6), %s1899_s2, 32, %s1901_s25, [#allocation4]  }
 0xc65   : > { %2239 = dma.done.wait (%p2113_p6), [#allocation4], 32  }
 0xc66   : > { %2241 = vsyncadd (%p2113_p6), [#allocation4], 4294967264 }
 0xc67 PF: > { %s2742_s18 = sld [smem:[#allocation6_spill]] }
 0xc6d   : > { %s31_s1 = sadd.s32 1, %s2742_s18  }
 0xc6e   : > { %p28_p7 = scmp.ge.s32.totalorder %s31_s1, 4  }
 0xc70   :  { %30 = sbr.rel (!%p28_p7) target bundleno = 12 (0xc), region = 168 }
 0xc75   :  { %1914 = vsyncpa [#allocation4], 1 }
 0xc76   :  { %1916 = vsyncpa [#allocation4 + $0x1], 1 }

</bundles_post_ra>
